<compile_context>
chip_gen: v5e
topology: v5e:2x2
jax: 0.10.0
libtpu: 0.0.40
codegen_flags: <defaults>
</compile_context>

<pallas_src>
import functools

import jax
import jax.numpy as jnp
from jax import lax
from jax.experimental import pallas as pl
from jax.experimental.pallas import tpu as pltpu


def _vq_kernel(x_ref, e_ref, et_ref, esqh_ref, q_ref, stats_ref,
               loss_acc, cnt_acc, *, k_pad, tile, n_inner, hw, dot_dtype):
    i = pl.program_id(2)

    @pl.when(i == 0)
    def _init():
        loss_acc[...] = jnp.zeros_like(loss_acc)
        cnt_acc[...] = jnp.zeros_like(cnt_acc)

    x_in = x_ref[...]                                   # (C, T) input dtype
    x = x_in.astype(jnp.float32)
    e = e_ref[...]                                      # (K_pad, C) dot dtype
    e_t = et_ref[...]                                   # (C, K_pad) dot dtype
    e_sq_half = esqh_ref[...]                           # (K_pad, 1) f32, 1e30 pad rows

    # scores^T[k, t] = sum_c e[k, c] * x[c, t]   -- both operands MXU-native.
    xe_t = lax.dot_general(e, x_in.astype(dot_dtype),
                           dimension_numbers=(((1,), (0,)), ((), ())),
                           preferred_element_type=jnp.float32)      # (K_pad, T)

    # distances / 2 (the per-position |x|^2 constant cannot change the argmin).
    dist = e_sq_half - xe_t                                         # (K_pad, T)

    # first-index argmin over the codebook (sublane) axis -> one-hot encodings.
    min_d = jnp.min(dist, axis=0, keepdims=True)                    # (1, T)
    row = lax.broadcasted_iota(jnp.int32, dist.shape, 0)
    idx = jnp.min(jnp.where(dist <= min_d, row, k_pad), axis=0, keepdims=True)
    hit = row == idx                                                # (K_pad, T)

    # quantized directly in NCHW layout: q[c, t] = sum_k e_T[c, k] * enc[k, t]
    q = lax.dot_general(e_t, hit.astype(dot_dtype),
                        dimension_numbers=(((1,), (0,)), ((), ())),
                        preferred_element_type=jnp.float32)         # (C, T)
    q_ref[...] = q.astype(q_ref.dtype)

    # cheap per-step partials: lane (XLU) reductions into tiny column scratches.
    hitf = hit.astype(jnp.float32)
    diff = q - x
    sq = diff * diff
    if hw is not None:  # spatial extent was padded up to a tile multiple
        t_glob = pl.program_id(1) * n_inner + i
        lane = lax.broadcasted_iota(jnp.int32, (1, tile), 1)
        valid = (t_glob * tile + lane) < hw
        hitf = jnp.where(valid, hitf, 0.0)
        sq = jnp.where(valid, sq, 0.0)
    cnt_acc[...] += jnp.sum(hitf, axis=1, keepdims=True)            # (K_pad, 1)
    loss_acc[...] += jnp.sum(sq, axis=1, keepdims=True)             # (C, 1)

    @pl.when(i == n_inner - 1)
    def _finalize():
        loss_sum = jnp.sum(loss_acc[...])                           # per-chunk sq. error
        col = lax.broadcasted_iota(jnp.int32, (k_pad, 8), 1)
        stats_ref[...] = jnp.where(col == 0, cnt_acc[...],          # col 0: counts
                                   jnp.where(col == 1, loss_sum, 0.0))


def vector_quantizer_forward(x_nchw, embedding, commitment_cost, *,
                             tile_hw=2048, dot_dtype=None,
                             vmem_budget_bytes=24 * 1024 * 1024):
    """Eval-mode VectorQuantizer forward. Returns (quantized_nchw, loss, perplexity)."""
    B, C, H, W = x_nchw.shape
    K, D = embedding.shape
    assert C == D, "channels must equal embedding_dim"
    HW = H * W
    in_dtype = x_nchw.dtype
    if dot_dtype is None:
        # bf16 inputs ride the MXU at native rate on v6e/v7x; f32 inputs keep
        # argmin parity with an f32 reference.
        dot_dtype = jnp.bfloat16 if in_dtype == jnp.bfloat16 else jnp.float32
    isz_in = jnp.dtype(in_dtype).itemsize
    isz_dot = jnp.dtype(dot_dtype).itemsize

    K_pad = 128 * pl.cdiv(K, 128)

    # Lane-dense spatial tile, sized to fit under a conservative VMEM budget
    # (safe on v7x's 64 MiB VMEM without touching vmem_limit_bytes).
    HW128 = 128 * pl.cdiv(HW, 128)
    tile = max(128, min((int(tile_hw) // 128) * 128, HW128))

    def _vmem_est(t):
        io = 4 * C * t * isz_in                 # double-buffered x-in + q-out blocks
        tmp = 6 * K_pad * t * 4                 # scores/dist/argmin/one-hot temporaries
        cb = 4 * K_pad * C * isz_dot + 2 * K_pad * 4
        scr = (C + K_pad + 16) * 128 * 4
        return io + tmp + cb + scr

    while tile > 128 and _vmem_est(tile) > vmem_budget_bytes:
        tile -= 128
    HW_pad = tile * pl.cdiv(HW, tile)
    n_t = HW_pad // tile

    # v7x shards "parallel" grid axes over its 2 TensorCores: if the batch alone
    # cannot feed both, split the spatial axis into parallel chunks.
    n_out = 2 if (B == 1 and n_t >= 2 and n_t % 2 == 0) else 1
    n_in = n_t // n_out

    # Grid-invariant codebook prep (hoisted): both orientations so neither MXU
    # operand needs a transpose; |e|^2/2 folds the "2*" out of the inner loop.
    # Pad sentinel stays in f32 to keep its margin.
    e_f32 = embedding.astype(jnp.float32)
    e_pad = jnp.zeros((K_pad, D), jnp.float32).at[:K].set(e_f32)
    e_in = e_pad.astype(dot_dtype)                   # (K_pad, C)
    e_t_in = e_pad.T.astype(dot_dtype)               # (C, K_pad)
    e_sq_half = jnp.full((K_pad, 1), 1e30, jnp.float32)
    e_sq_half = e_sq_half.at[:K, 0].set(0.5 * jnp.sum(e_f32 * e_f32, axis=1))

    # NCHW is already (B, C, H*W) row-major: this reshape moves no data.  Only
    # non-128-divisible spatial extents pay a pad copy.
    x3 = x_nchw.reshape(B, C, HW)
    if HW_pad != HW:
        x3 = jnp.pad(x3, ((0, 0), (0, 0), (0, HW_pad - HW)))

    kernel = functools.partial(
        _vq_kernel, k_pad=K_pad, tile=tile, n_inner=n_in,
        hw=(HW if HW_pad != HW else None), dot_dtype=dot_dtype)

    n_rows = B * HW_pad
    cost = pl.CostEstimate(
        flops=int(4 * n_rows * C * K_pad),          # two MXU matmuls
        transcendentals=0,
        bytes_accessed=int(2 * n_rows * C * isz_in + 2 * K_pad * C * isz_dot
                           + 4 * K_pad + 4 * B * n_out * K_pad * 8),
    )

    q3, stats = pl.pallas_call(
        kernel,
        out_shape=(
            jax.ShapeDtypeStruct((B, C, HW_pad), in_dtype),           # quantized (NCHW)
            jax.ShapeDtypeStruct((B, n_out, K_pad, 8), jnp.float32),  # partial stats
        ),
        grid_spec=pltpu.PrefetchScalarGridSpec(
            num_scalar_prefetch=0,
            grid=(B, n_out, n_in),
            in_specs=[
                pl.BlockSpec((pl.Squeezed(), C, tile),
                             lambda b, o, i: (b, 0, o * n_in + i)),   # activation slab
                pl.BlockSpec((K_pad, C), lambda b, o, i: (0, 0)),     # codebook
                pl.BlockSpec((C, K_pad), lambda b, o, i: (0, 0)),     # codebook^T
                pl.BlockSpec((K_pad, 1), lambda b, o, i: (0, 0)),     # |e|^2 / 2
            ],
            out_specs=[
                pl.BlockSpec((pl.Squeezed(), C, tile),
                             lambda b, o, i: (b, 0, o * n_in + i)),
                pl.BlockSpec((pl.Squeezed(), pl.Squeezed(), K_pad, 8),
                             lambda b, o, i: (b, o, 0, 0)),
            ],
            scratch_shapes=[
                pltpu.VMEM((C, 1), jnp.float32),      # squared-error column accumulator
                pltpu.VMEM((K_pad, 1), jnp.float32),  # codebook usage counts
            ],
        ),
        compiler_params=pltpu.CompilerParams(
            dimension_semantics=("parallel", "parallel", "arbitrary"),
        ),
        cost_estimate=cost,
    )(x3, e_in, e_t_in, e_sq_half)

    # Tiny finalization in plain JAX (keeps the parallel grid axes parallel).
    counts = jnp.sum(stats[..., 0], axis=(0, 1))        # (K_pad,); pad cols exactly 0
    sq_err = jnp.sum(stats[:, :, 0, 1])
    mse = sq_err / jnp.float32(B * HW * C)
    loss = jnp.float32(commitment_cost) * mse
    avg = counts / jnp.float32(B * HW)
    perplexity = jnp.exp(-jnp.sum(avg * jnp.log(avg + 1e-10)))

    if HW_pad != HW:
        q3 = q3[:, :, :HW]
    # straight-through estimator: forward value == quantized
    quantized_nchw = q3.reshape(B, C, H, W)
    return quantized_nchw, loss, perplexity


def _reference_forward(x_nchw, embedding, commitment_cost):
    """Pure-JAX reference mirroring the PyTorch module (eval mode)."""
    B, C, H, W = x_nchw.shape
    K, D = embedding.shape
    inputs = jnp.transpose(x_nchw, (0, 2, 3, 1)).astype(jnp.float32)
    flat = inputs.reshape(-1, D)
    emb = embedding.astype(jnp.float32)
    dist = (jnp.sum(flat ** 2, axis=1, keepdims=True)
            - 2.0 * flat @ emb.T
            + jnp.sum(emb ** 2, axis=1))
    idx = jnp.argmin(dist, axis=1)
    enc = jax.nn.one_hot(idx, K, dtype=flat.dtype)
    quant = (enc @ emb).reshape(inputs.shape)
    e_latent = jnp.mean((quant - inputs) ** 2)
    loss = commitment_cost * e_latent
    avg = jnp.mean(enc, axis=0)
    perp = jnp.exp(-jnp.sum(avg * jnp.log(avg + 1e-10)))
    return jnp.transpose(quant, (0, 3, 1, 2)), loss, perp


if __name__ == "__main__":
    key = jax.random.PRNGKey(0)
    k_x, k_e, k_x2 = jax.random.split(key, 3)

    # module hyper-params (synthetic, deterministic init)
    num_embeddings = 32
    embedding_dim = 16
    commitment_cost = 0.25
    embedding = jax.random.normal(k_e, (num_embeddings, embedding_dim), jnp.float32)

    # Case 1: 128-divisible spatial extent (no padding path).
    B, H, W = 2, 16, 16
    x = jax.random.normal(k_x, (B, embedding_dim, H, W), dtype=jnp.float32)   # NCHW
    q, loss, perp = vector_quantizer_forward(x, embedding, commitment_cost)
    jax.block_until_ready((q, loss, perp))
    q_ref, loss_ref, perp_ref = _reference_forward(x, embedding, commitment_cost)
    assert q.shape == (B, embedding_dim, H, W)
    assert q.dtype == x.dtype
    assert jnp.allclose(q, q_ref, atol=1e-5), "quantized mismatch"
    assert jnp.allclose(loss, loss_ref, atol=1e-5, rtol=1e-5), "loss mismatch"
    assert jnp.allclose(perp, perp_ref, atol=1e-3, rtol=1e-4), "perplexity mismatch"

    # Case 2: non-128-divisible spatial extent (pad + lane-mask path).
    B2, H2, W2 = 2, 10, 10
    x2 = jax.random.normal(k_x2, (B2, embedding_dim, H2, W2), dtype=jnp.float32)
    q2, loss2, perp2 = vector_quantizer_forward(x2, embedding, commitment_cost)
    jax.block_until_ready((q2, loss2, perp2))
    q2_ref, loss2_ref, perp2_ref = _reference_forward(x2, embedding, commitment_cost)
    assert q2.shape == (B2, embedding_dim, H2, W2)
    assert jnp.allclose(q2, q2_ref, atol=1e-5), "quantized mismatch (padded)"
    assert jnp.allclose(loss2, loss2_ref, atol=1e-5, rtol=1e-5), "loss mismatch (padded)"
    assert jnp.allclose(perp2, perp2_ref, atol=1e-3, rtol=1e-4), "perplexity mismatch (padded)"

    print("KERNEL_OK")
</pallas_src>

<mosaic_0001>
module attributes {stable_mosaic.version = 11 : i64} {
  func.func @_vq_kernel(%arg0: i32, %arg1: i32, %arg2: i32, %arg3: memref<1x16x256xf32, #tpu.memory_space<vmem>>, %arg4: memref<128x16xf32, #tpu.memory_space<vmem>>, %arg5: memref<16x128xf32, #tpu.memory_space<vmem>>, %arg6: memref<128x1xf32, #tpu.memory_space<vmem>>, %arg7: memref<1x16x256xf32, #tpu.memory_space<vmem>>, %arg8: memref<1x1x128x8xf32, #tpu.memory_space<vmem>>, %arg9: memref<16x1xf32, #tpu.memory_space<vmem>>, %arg10: memref<128x1xf32, #tpu.memory_space<vmem>>) attributes {dimension_semantics = [#tpu.dimension_semantics<parallel>, #tpu.dimension_semantics<parallel>, #tpu.dimension_semantics<arbitrary>], iteration_bounds = array<i64: 2, 1, 1>, scalar_prefetch = 0 : i64, scratch_operands = 2 : i64, tpu.core_type = #tpu.core_type<tc>, window_params = [{transform_indices = @transform_0, window_bounds = array<i64: 1, 16, 256>}, {pipeline_mode = #tpu.pipeline_mode<synchronous>, transform_indices = @transform_1, window_bounds = array<i64: 128, 16>}, {pipeline_mode = #tpu.pipeline_mode<synchronous>, transform_indices = @transform_2, window_bounds = array<i64: 16, 128>}, {pipeline_mode = #tpu.pipeline_mode<synchronous>, transform_indices = @transform_3, window_bounds = array<i64: 128, 1>}, {transform_indices = @transform_4, window_bounds = array<i64: 1, 16, 256>}, {transform_indices = @transform_5, window_bounds = array<i64: 1, 1, 128, 8>}]} {
    %c0_i32 = arith.constant 0 : i32
    %0 = arith.cmpi eq, %arg2, %c0_i32 : i32
    %1 = arith.extui %0 : i1 to i32
    %c0_i32_0 = arith.constant 0 : i32
    %2 = arith.cmpi ne, %1, %c0_i32_0 : i32
    scf.if %2 {
      %cst_27 = arith.constant 0.000000e+00 : f32
      %45 = vector.broadcast %cst_27 : f32 to vector<16x1xf32>
      %c0_28 = arith.constant 0 : index
      %c0_29 = arith.constant 0 : index
      %46 = vector.load %arg9[%c0_28, %c0_29] : memref<16x1xf32, #tpu.memory_space<vmem>>, vector<16x1xf32>
      tpu.vector_store %arg9[%c0_28, %c0_29], %45 {strides = array<i32>} : memref<16x1xf32, #tpu.memory_space<vmem>>, vector<16x1xf32>,
      %cst_30 = arith.constant 0.000000e+00 : f32
      %47 = vector.broadcast %cst_30 : f32 to vector<128x1xf32>
      %c0_31 = arith.constant 0 : index
      %c0_32 = arith.constant 0 : index
      %48 = vector.load %arg10[%c0_31, %c0_32] : memref<128x1xf32, #tpu.memory_space<vmem>>, vector<128x1xf32>
      tpu.vector_store %arg10[%c0_31, %c0_32], %47 {strides = array<i32>} : memref<128x1xf32, #tpu.memory_space<vmem>>, vector<128x1xf32>,
    } else {
    }
    %c0 = arith.constant 0 : index
    %c0_1 = arith.constant 0 : index
    %c0_2 = arith.constant 0 : index
    %3 = vector.load %arg3[%c0, %c0_1, %c0_2] : memref<1x16x256xf32, #tpu.memory_space<vmem>>, vector<1x16x256xf32>
    %4 = vector.shape_cast %3 : vector<1x16x256xf32> to vector<16x256xf32>
    %c0_3 = arith.constant 0 : index
    %c0_4 = arith.constant 0 : index
    %5 = vector.load %arg4[%c0_3, %c0_4] : memref<128x16xf32, #tpu.memory_space<vmem>>, vector<128x16xf32>
    %c0_5 = arith.constant 0 : index
    %c0_6 = arith.constant 0 : index
    %6 = vector.load %arg5[%c0_5, %c0_6] : memref<16x128xf32, #tpu.memory_space<vmem>>, vector<16x128xf32>
    %c0_7 = arith.constant 0 : index
    %c0_8 = arith.constant 0 : index
    %7 = vector.load %arg6[%c0_7, %c0_8] : memref<128x1xf32, #tpu.memory_space<vmem>>, vector<128x1xf32>
    %cst = arith.constant dense<0.000000e+00> : vector<128x256xf32>
    %8 = tpu.matmul %5, %4, %cst {dimension_numbers = #tpu.dot_dimension_numbers<[1], [0], [0], [1], [0, 0, 1, 1], [], []>} : vector<128x16xf32>, vector<16x256xf32>, vector<128x256xf32> -> vector<128x256xf32>
    %9 = vector.broadcast %7 : vector<128x1xf32> to vector<128x256xf32>
    %10 = arith.subf %9, %8 : vector<128x256xf32>
    %cst_9 = arith.constant dense<0x7F800000> : vector<256xf32>
    %11 = vector.multi_reduction <minimumf>, %10, %cst_9 [0] : vector<128x256xf32> to vector<256xf32>
    %12 = vector.shape_cast %11 : vector<256xf32> to vector<1x256xf32>
    %13 = tpu.iota {dimensions = array<i32: 0>} : vector<128x256xi32>
    %14 = vector.broadcast %12 : vector<1x256xf32> to vector<128x256xf32>
    %15 = arith.cmpf ole, %10, %14 : vector<128x256xf32>
    %c128_i32 = arith.constant 128 : i32
    %16 = vector.broadcast %c128_i32 : i32 to vector<128x256xi32>
    %17 = arith.select %15, %13, %16 : vector<128x256xi1>, vector<128x256xi32>
    %cst_10 = arith.constant dense<2147483647> : vector<256xi32>
    %18 = vector.multi_reduction <minsi>, %17, %cst_10 [0] : vector<128x256xi32> to vector<256xi32>
    %19 = vector.shape_cast %18 : vector<256xi32> to vector<1x256xi32>
    %20 = vector.broadcast %19 : vector<1x256xi32> to vector<128x256xi32>
    %21 = arith.cmpi eq, %13, %20 : vector<128x256xi32>
    %22 = arith.extui %21 : vector<128x256xi1> to vector<128x256xi32>
    %23 = arith.sitofp %22 : vector<128x256xi32> to vector<128x256xf32>
    %cst_11 = arith.constant dense<0.000000e+00> : vector<16x256xf32>
    %24 = tpu.matmul %6, %23, %cst_11 {dimension_numbers = #tpu.dot_dimension_numbers<[1], [0], [0], [1], [0, 0, 1, 1], [], []>} : vector<16x128xf32>, vector<128x256xf32>, vector<16x256xf32> -> vector<16x256xf32>
    %c0_12 = arith.constant 0 : index
    %c0_13 = arith.constant 0 : index
    %c0_14 = arith.constant 0 : index
    %25 = vector.load %arg7[%c0_12, %c0_13, %c0_14] : memref<1x16x256xf32, #tpu.memory_space<vmem>>, vector<1x16x256xf32>
    %26 = vector.shape_cast %25 : vector<1x16x256xf32> to vector<16x256xf32>
    %27 = vector.shape_cast %24 : vector<16x256xf32> to vector<1x16x256xf32>
    tpu.vector_store %arg7[%c0_12, %c0_13, %c0_14], %27 {strides = array<i32>} : memref<1x16x256xf32, #tpu.memory_space<vmem>>, vector<1x16x256xf32>,
    %28 = arith.extui %21 : vector<128x256xi1> to vector<128x256xi32>
    %29 = arith.sitofp %28 : vector<128x256xi32> to vector<128x256xf32>
    %30 = arith.subf %24, %4 : vector<16x256xf32>
    %31 = arith.mulf %30, %30 : vector<16x256xf32>
    %c0_15 = arith.constant 0 : index
    %c0_16 = arith.constant 0 : index
    %32 = vector.load %arg10[%c0_15, %c0_16] : memref<128x1xf32, #tpu.memory_space<vmem>>, vector<128x1xf32>
    %cst_17 = arith.constant dense<0.000000e+00> : vector<128xf32>
    %33 = vector.multi_reduction <add>, %29, %cst_17 [1] : vector<128x256xf32> to vector<128xf32>
    %34 = vector.shape_cast %33 : vector<128xf32> to vector<128x1xf32>
    %35 = arith.addf %32, %34 : vector<128x1xf32>
    %c0_18 = arith.constant 0 : index
    %c0_19 = arith.constant 0 : index
    %36 = vector.load %arg10[%c0_18, %c0_19] : memref<128x1xf32, #tpu.memory_space<vmem>>, vector<128x1xf32>
    tpu.vector_store %arg10[%c0_18, %c0_19], %35 {strides = array<i32>} : memref<128x1xf32, #tpu.memory_space<vmem>>, vector<128x1xf32>,
    %c0_20 = arith.constant 0 : index
    %c0_21 = arith.constant 0 : index
    %37 = vector.load %arg9[%c0_20, %c0_21] : memref<16x1xf32, #tpu.memory_space<vmem>>, vector<16x1xf32>
    %cst_22 = arith.constant dense<0.000000e+00> : vector<16xf32>
    %38 = vector.multi_reduction <add>, %31, %cst_22 [1] : vector<16x256xf32> to vector<16xf32>
    %39 = vector.shape_cast %38 : vector<16xf32> to vector<16x1xf32>
    %40 = arith.addf %37, %39 : vector<16x1xf32>
    %c0_23 = arith.constant 0 : index
    %c0_24 = arith.constant 0 : index
    %41 = vector.load %arg9[%c0_23, %c0_24] : memref<16x1xf32, #tpu.memory_space<vmem>>, vector<16x1xf32>
    tpu.vector_store %arg9[%c0_23, %c0_24], %40 {strides = array<i32>} : memref<16x1xf32, #tpu.memory_space<vmem>>, vector<16x1xf32>,
    %c0_i32_25 = arith.constant 0 : i32
    %42 = arith.cmpi eq, %arg2, %c0_i32_25 : i32
    %43 = arith.extui %42 : i1 to i32
    %c0_i32_26 = arith.constant 0 : i32
    %44 = arith.cmpi ne, %43, %c0_i32_26 : i32
    scf.if %44 {
      %c0_27 = arith.constant 0 : index
      %c0_28 = arith.constant 0 : index
      %45 = vector.load %arg9[%c0_27, %c0_28] : memref<16x1xf32, #tpu.memory_space<vmem>>, vector<16x1xf32>
      %46 = vector.shape_cast %45 : vector<16x1xf32> to vector<1x16x1xf32>
      %cst_29 = arith.constant dense<0.000000e+00> : vector<1xf32>
      %47 = vector.multi_reduction <add>, %46, %cst_29 [1, 2] : vector<1x16x1xf32> to vector<1xf32>
      %48 = vector.shape_cast %47 : vector<1xf32> to vector<1x1x1xf32>
      %49 = vector.extract %48[0, 0, 0] : f32 from vector<1x1x1xf32>
      %50 = tpu.iota {dimensions = array<i32: 1>} : vector<128x8xi32>
      %c0_i32_30 = arith.constant 0 : i32
      %51 = vector.broadcast %c0_i32_30 : i32 to vector<128x8xi32>
      %52 = arith.cmpi eq, %50, %51 : vector<128x8xi32>
      %c0_31 = arith.constant 0 : index
      %c0_32 = arith.constant 0 : index
      %53 = vector.load %arg10[%c0_31, %c0_32] : memref<128x1xf32, #tpu.memory_space<vmem>>, vector<128x1xf32>
      %c1_i32 = arith.constant 1 : i32
      %54 = vector.broadcast %c1_i32 : i32 to vector<128x8xi32>
      %55 = arith.cmpi eq, %50, %54 : vector<128x8xi32>
      %cst_33 = arith.constant 0.000000e+00 : f32
      %56 = vector.broadcast %49 : f32 to vector<128x8xf32>
      %57 = vector.broadcast %cst_33 : f32 to vector<128x8xf32>
      %58 = arith.select %55, %56, %57 : vector<128x8xi1>, vector<128x8xf32>
      %59 = vector.shape_cast %53 : vector<128x1xf32> to vector<128x1xf32>
      %60 = vector.broadcast %59 : vector<128x1xf32> to vector<128x8xf32>
      %61 = arith.select %52, %60, %58 : vector<128x8xi1>, vector<128x8xf32>
      %c0_34 = arith.constant 0 : index
      %c0_35 = arith.constant 0 : index
      %c0_36 = arith.constant 0 : index
      %c0_37 = arith.constant 0 : index
      %62 = vector.load %arg8[%c0_34, %c0_35, %c0_36, %c0_37] : memref<1x1x128x8xf32, #tpu.memory_space<vmem>>, vector<1x1x128x8xf32>
      %63 = vector.shape_cast %62 : vector<1x1x128x8xf32> to vector<128x8xf32>
      %64 = vector.shape_cast %61 : vector<128x8xf32> to vector<1x1x128x8xf32>
      tpu.vector_store %arg8[%c0_34, %c0_35, %c0_36, %c0_37], %64 {strides = array<i32>} : memref<1x1x128x8xf32, #tpu.memory_space<vmem>>, vector<1x1x128x8xf32>,
    } else {
    }
    return
  }
  func.func @transform_0(%arg0: i32, %arg1: i32, %arg2: i32) -> (i32, i32, i32) {
    %c1_i32 = arith.constant 1 : i32
    %0 = arith.muli %arg1, %c1_i32 : i32
    %1 = arith.addi %0, %arg2 : i32
    %c0_i32 = arith.constant 0 : i32
    %c0_i32_0 = arith.constant 0 : i32
    return %arg0, %c0_i32, %1 : i32, i32, i32
  }
  func.func @transform_1(%arg0: i32, %arg1: i32, %arg2: i32) -> (i32, i32) {
    %c0_i32 = arith.constant 0 : i32
    %c0_i32_0 = arith.constant 0 : i32
    %c0_i32_1 = arith.constant 0 : i32
    return %c0_i32, %c0_i32_0 : i32, i32
  }
  func.func @transform_2(%arg0: i32, %arg1: i32, %arg2: i32) -> (i32, i32) {
    %c0_i32 = arith.constant 0 : i32
    %c0_i32_0 = arith.constant 0 : i32
    %c0_i32_1 = arith.constant 0 : i32
    return %c0_i32, %c0_i32_0 : i32, i32
  }
  func.func @transform_3(%arg0: i32, %arg1: i32, %arg2: i32) -> (i32, i32) {
    %c0_i32 = arith.constant 0 : i32
    %c0_i32_0 = arith.constant 0 : i32
    %c0_i32_1 = arith.constant 0 : i32
    return %c0_i32, %c0_i32_0 : i32, i32
  }
  func.func @transform_4(%arg0: i32, %arg1: i32, %arg2: i32) -> (i32, i32, i32) {
    %c1_i32 = arith.constant 1 : i32
    %0 = arith.muli %arg1, %c1_i32 : i32
    %1 = arith.addi %0, %arg2 : i32
    %c0_i32 = arith.constant 0 : i32
    %c0_i32_0 = arith.constant 0 : i32
    return %arg0, %c0_i32, %1 : i32, i32, i32
  }
  func.func @transform_5(%arg0: i32, %arg1: i32, %arg2: i32) -> (i32, i32, i32, i32) {
    %c0_i32 = arith.constant 0 : i32
    %c0_i32_0 = arith.constant 0 : i32
    %c0_i32_1 = arith.constant 0 : i32
    return %arg0, %arg1, %c0_i32, %c0_i32_0 : i32, i32, i32, i32
  }
}

</mosaic_0001>

<bundles_post_ra>
// kernel: tpu_custom_call.1
= control target key start
LH: loop header
LB: loop body
LE: loop exit
PB: predicated region body
PF: predicated region fallthrough
CT: control target
= control target key end

     0   :  { %11 = vsyncpa [#allocation5], 0  ;;  %s2712_s0 = inlined_call_operand.vmem [shape: f32[2,16,256], index: 0, kind: input, shape index: {}]   ;;  %s2713_s1 = inlined_call_operand.vmem [shape: f32[128,16], index: 1, kind: input, shape index: {}]   ;;  %s2714_s2 = inlined_call_operand.vmem [shape: f32[16,128], index: 2, kind: input, shape index: {}]   ;;  %s2715_s3 = inlined_call_operand.vmem [shape: f32[128,1], index: 3, kind: input, shape index: {}]   ;;  %s2716_s4 = inlined_call_operand.hbm [shape: f32[2,16,256], index: 4, kind: output, shape index: {0}]   ;;  %s2717_s5 = inlined_call_operand.vmem [shape: f32[2,1,128,8], index: 5, kind: output, shape index: {1}]  }
   0x1   :  { %13 = vsyncpa [#allocation5 + $0x1], 0  ;;  %s1719_s18 = smov 0   ;;  %s1721_s19 = smov 0  }
   0x2   :  { %s1723_s20 = smov 0   ;;  %s1725_s21 = smov 0  }
   0x3   :  { %s1727_s22 = smov 0   ;;  %s1729_s23 = smov 0  }
   0x4 LB: > { %s1417_s24 = sadd.s32 4294967295, %s1682_s23   ;;  %s1418_s25 = sadd.s32 4294967294, %s1682_s23   ;;  %s1682_s23 = sphi %s1729_s23, %s19_s23   ;;  %s1678_s22 = sphi %s1727_s22, %s2752_s22   ;;  %s1674_s21 = sphi %s1725_s21, %s2751_s21   ;;  %s1670_s20 = sphi %s1723_s20, %s2750_s20   ;;  %s1666_s19 = sphi %s1721_s19, %s2749_s19   ;;  %s1662_s18 = sphi %s1719_s18, %s2748_s18  }
   0x5   : > { %s38_s26 = sadd.s32 1, %s1678_s22  ;;  %s142_s27 = sadd.s32 1, %s1670_s20 }
   0x6   : > { %p40_p0 = scmp.ge.s32.totalorder %s38_s26, 2  ;;  %p152_p1 = scmp.ne.s32.totalorder %s1670_s20, %s1666_s19 }
   0x7   : > { %p153_p2 = scmp.eq.s32.totalorder %s1417_s24, 1  ;;  %p158_p3 = scmp.ne.s32.totalorder %s1666_s19, %s1662_s18 }
   0x8   : > { %s2754_s26 = smov (%p40_p0, %s38_s26), 0  ;;  %p159_p5 = scmp.eq.s32.totalorder %s1418_s25, 1 }
   0x9   : > { %p1759_p4 = por %p153_p2, %p152_p1  ;;  %s137_s29 = ssub.s32 %s1678_s22, %s2754_s26 }
   0xa   : > { %p1421_p6 = scmp.ge.s32.totalorder %s1682_s23, 1  ;;  %p140_p7 = scmp.eq.s32.totalorder %s137_s29, 0 }
   0xb   : > { %p1766_p8 = por %p159_p5, %p158_p3  ;;  %p229_p9 = scmp.lt.s32.totalorder %s1682_s23, 3 }
   0xc   : > { %s1772_s6 = scalar_select %p140_p7, %s1670_s20, %s142_s27  }
   0xd   : > { %p230_p10 = pnand %p1421_p6, %p229_p9 }
   0xe   : > { %p273_p11 = scmp.lt.s32.totalorder (!%p230_p10), %s1674_s21, 1  ;;  %s257_s14 = sand.u32 (!%p230_p10), 1, %s1666_s19  }
   0xf   : > { %233 = sbr.rel (%p230_p10) target bundleno = 799 (0x31f), region = 36  ;;  %s1422_s16 = sshll.u32 (!%p230_p10), %s257_s14, 5 }
  0x10   : > { %s2591_s17 = scalar_lea.vmem (!%p230_p10), [#allocation4], %s1422_s16  ;;  %s1530_s24 = sshll.u32 (!%p230_p10), %s1674_s21, 5 }
  0x11   : > { %s1286_s29 = scalar_lea.hbm (!%p230_p10), %s2716_s4, %s1530_s24  ;;  %s1263_s8 = scalar_lea.sflag (!%p230_p10), [#allocation5], %s257_s14 }
  0x12   : > { %s1289_s7 = sshll.u32 (!%p230_p10), %s1286_s29, 4  ;;  %s1624_s16 = scalar_lea.hbm (!%p230_p10), %s2716_s4, 64  ;;  %s1290_s7 = int_to_ptr.hbm [resolvable:$true] %s1289_s7 }
  0x13   : > { %s1618_s10 = sshra.s32 (!%p230_p10), %s1290_s7, 4  ;;  %s1619_s10 = int_to_ptr.hbm [resolvable:$true] %s1618_s10 }
  0x14   : > { %v1684_v0 = vmov 0   ;;  %v339_v1 = vld [vmem:[%s2715_s3] sm:$0xff]  ;;  %s1779_s9 = scalar_select %p273_p11, %s1674_s21, 1  ;;  %v341_v2 = vld [vmem:[%s2715_s3 + $0x10] sm:$0xff]  ;;  %vm355_vm0 = vcmask 130048   ;;  %v1803_v9 = vld [vmem:[%s2713_s1 + $0x48] sm:$0xff] }
  0x15   : > { %1597 = vset.pattern.permute.xlu0 %v1684_v0  ;;  %1598 = vset.pattern.permute.xlu1 %v1684_v0  ;;  %v321_v7 = vld [vmem:[%s2713_s1] sm:$0xff]  ;;  %v331_v8 = vld [vmem:[%s2713_s1 + $0x50] sm:$0xff]  ;;  %v340_v10 = vld [vmem:[%s2715_s3 + $0x8] sm:$0xff]  ;;  %s1620_s11 = scalar_lea.hbm %s1619_s10, 32  ;;  %p1625_p1 = scmp.lt.s32.totalorder %s1619_s10, %s2716_s4 }
  0x16   : > { %536 = vperm.xlu0 %1597, %v339_v1   ;;  %1599 = vset.pattern.permute.xlu2 %v1684_v0  ;;  %s1528_s12 = sshll.u32 %s1779_s9, 5  ;;  %v342_v11 = vld [vmem:[%s2715_s3 + $0x18] sm:$0xff]  ;;  %v322_v12 = vld [vmem:[%s2713_s1 + $0x8] sm:$0xff]  ;;  %v345_v14 = vld [vmem:[%s2715_s3 + $0x30] sm:$0xff]  ;;  %p1621_p12 = scmp.ne.s32.totalorder %s1619_s10, %s1620_s11 }
  0x17   : > { %546 = vperm.xlu1 %1598, %v341_v2   ;;  %s1788_s15 = scalar_lea.vmem %s2712_s0, %s1528_s12  ;;  %v332_v13 = vld [vmem:[%s2713_s1 + $0x58] sm:$0xff]  ;;  %v343_v16 = vld [vmem:[%s2715_s3 + $0x20] sm:$0xff]  ;;  %v323_v17 = vld [vmem:[%s2713_s1 + $0x10] sm:$0xff]  ;;  %p1626_p2 = scmp.lt.s32.totalorder %s1624_s16, %s1620_s11 }
  0x18   : > { %v319_v3 = vld [vmem:[%s1788_s15 + $0x10] sm:$0xff]  ;;  %v320_v4 = vld [vmem:[%s1788_s15 + $0x18] sm:$0xff]  ;;  %v317_v5 = vld [vmem:[%s1788_s15] sm:$0xff]  ;;  %556 = vperm.xlu2 %1599, %v343_v16   ;;  %p1622_p13 = pnand %p1621_p12, %p1759_p4 }
  0x19   : > { %418 = vmatpush.msra.mxu0 %v319_v3  ;;  %1531 = vmatpush.msra.mxu2 %v319_v3  ;;  %v318_v6 = vld [vmem:[%s1788_s15 + $0x8] sm:$0xff]  ;;  %v346_v15 = vld [vmem:[%s2715_s3 + $0x38] sm:$0xff]  ;;  %v333_v18 = vld [vmem:[%s2713_s1 + $0x60] sm:$0xff]  ;;  %p1627_p3 = por %p1626_p2, %p1625_p1 }
  0x1a   : > { %483 = vmatpush.msra.mxu1 %v320_v4  ;;  %1533 = vmatpush.msra.mxu3 %v320_v4  ;;  %v348_v19 = vld [vmem:[%s2715_s3 + $0x48] sm:$0xff]  ;;  %v349_v20 = vld [vmem:[%s2715_s3 + $0x50] sm:$0xff]  ;;  %v324_v22 = vld [vmem:[%s2713_s1 + $0x18] sm:$0xff]  ;;  %p1623_p0 = pneg %p1622_p13 }
  0x1b   : > { %419 = vmatpush.msra.mxu0 %v317_v5  ;;  %1532 = vmatpush.msra.mxu2 %v317_v5  ;;  %v344_v21 = vld [vmem:[%s2715_s3 + $0x28] sm:$0xff]  ;;  %v351_v24 = vld [vmem:[%s2715_s3 + $0x60] sm:$0xff]  ;;  %v335_v28 = vld [vmem:[%s2713_s1 + $0x70] sm:$0xff] }
  0x1c   : > { %484 = vmatpush.msra.mxu1 %v318_v6  ;;  %1534 = vmatpush.msra.mxu3 %v318_v6  ;;  %v334_v23 = vld [vmem:[%s2713_s1 + $0x68] sm:$0xff]  ;;  %v347_v26 = vld [vmem:[%s2715_s3 + $0x40] sm:$0xff]  ;;  %v354_v29 = vld [vmem:[%s2715_s3 + $0x78] sm:$0xff]  ;;  %p1628_p5 = pnand %p1627_p3, %p1623_p0 }
  0x1d   : > { %1427 = vmatmul.msk.f32.vlgmr.msra.gmra.mxu0 %vm355_vm0, %v321_v7  ;;  %1437 = vmatmul.msk.f32.vlgmr.msra.gmra.mxu2 %vm355_vm0, %v331_v8  ;;  %v352_v25 = vld [vmem:[%s2715_s3 + $0x68] sm:$0xff]  ;;  %v325_v27 = vld [vmem:[%s2713_s1 + $0x20] sm:$0xff]  ;;  %v350_v30 = vld [vmem:[%s2715_s3 + $0x58] sm:$0xff] }
  0x1e   : > { %1443 = vmatmul.msk.f32.vlgmr.msra.gmra.mxu1 %vm355_vm0, %v321_v7  ;;  %1452 = vmatmul.msk.f32.vlgmr.msra.gmra.mxu3 %vm355_vm0, %v1803_v9  ;;  %v326_v31 = vld [vmem:[%s2713_s1 + $0x28] sm:$0xff]  ;;  %v336_v32 = vld [vmem:[%s2713_s1 + $0x78] sm:$0xff]  ;;  %v353_v33 = vld [vmem:[%s2715_s3 + $0x70] sm:$0xff] }
  0x1f   : > { %541 = vperm.xlu0 %1597, %v340_v10   ;;  %551 = vperm.xlu1 %1598, %v342_v11   ;;  %v327_v34 = vld [vmem:[%s2713_s1 + $0x30] sm:$0xff]  ;;  %v328_v35 = vld [vmem:[%s2713_s1 + $0x38] sm:$0xff]  ;;  %v329_v36 = vld [vmem:[%s2713_s1 + $0x40] sm:$0xff] }
  0x20   : > { %561 = vperm.xlu2 %1599, %v344_v21  }
  0x25   : > { %1428 = vmatmul.msk.f32.gmra.mxu0 %vm355_vm0, %v322_v12  ;;  %1438 = vmatmul.msk.f32.gmra.mxu2 %vm355_vm0, %v332_v13 }
  0x26   : > { %1444 = vmatmul.msk.f32.gmra.mxu1 %vm355_vm0, %v322_v12  ;;  %1453 = vmatmul.msk.f32.gmra.mxu3 %vm355_vm0, %v331_v8 }
  0x27   : > { %566 = vperm.xlu0 %1597, %v345_v14   ;;  %571 = vperm.xlu1 %1598, %v346_v15  }
  0x28   : > { %576 = vperm.xlu2 %1599, %v347_v26  }
  0x2d   : > { %1429 = vmatmul.msk.f32.gmra.mxu0 %vm355_vm0, %v323_v17  ;;  %1439 = vmatmul.msk.f32.gmra.mxu2 %vm355_vm0, %v333_v18 }
  0x2e   : > { %1445 = vmatmul.msk.f32.gmra.mxu1 %vm355_vm0, %v323_v17  ;;  %1454 = vmatmul.msk.f32.gmra.mxu3 %vm355_vm0, %v332_v13 }
  0x2f   : > { %581 = vperm.xlu0 %1597, %v348_v19   ;;  %586 = vperm.xlu1 %1598, %v349_v20  }
  0x30   : > { %591 = vperm.xlu2 %1599, %v350_v30  }
  0x35   : > { %1430 = vmatmul.msk.f32.gmra.mxu0 %vm355_vm0, %v324_v22  ;;  %1440 = vmatmul.msk.f32.gmra.mxu2 %vm355_vm0, %v334_v23 }
  0x36   : > { %1446 = vmatmul.msk.f32.gmra.mxu1 %vm355_vm0, %v324_v22  ;;  %1455 = vmatmul.msk.f32.gmra.mxu3 %vm355_vm0, %v333_v18 }
  0x37   : > { %596 = vperm.xlu0 %1597, %v351_v24   ;;  %601 = vperm.xlu1 %1598, %v352_v25  }
  0x38   : > { %606 = vperm.xlu2 %1599, %v353_v33  }
  0x3d   : > { %1431 = vmatmul.msk.f32.gmra.mxu0 %vm355_vm0, %v325_v27  ;;  %1441 = vmatmul.msk.f32.gmra.mxu2 %vm355_vm0, %v335_v28 }
  0x3e   : > { %1447 = vmatmul.msk.f32.gmra.mxu1 %vm355_vm0, %v325_v27  ;;  %1456 = vmatmul.msk.f32.gmra.mxu3 %vm355_vm0, %v334_v23 }
  0x3f   : > { %611 = vperm.xlu0 %1597, %v354_v29  }
  0x45   : > { %1432 = vmatmul.msk.f32.gmra.mxu0 %vm355_vm0, %v326_v31  ;;  %1442 = vmatmul.msk.f32.gmra.mxu2 %vm355_vm0, %v336_v32 }
  0x46   : > { %1448 = vmatmul.msk.f32.gmra.mxu1 %vm355_vm0, %v326_v31  ;;  %1457 = vmatmul.msk.f32.gmra.mxu3 %vm355_vm0, %v335_v28 }
  0x4d   : > { %1433 = vmatmul.msk.f32.gmra.mxu0 %vm355_vm0, %v327_v34 }
  0x4e   : > { %1449 = vmatmul.msk.f32.gmra.mxu1 %vm355_vm0, %v327_v34  ;;  %1458 = vmatmul.msk.f32.gmra.mxu3 %vm355_vm0, %v336_v32 }
  0x55   : > { %1434 = vmatmul.msk.f32.gmra.mxu0 %vm355_vm0, %v328_v35 }
  0x56   : > { %1450 = vmatmul.msk.f32.gmra.mxu1 %vm355_vm0, %v328_v35 }
  0x5d   : > { %1435 = vmatmul.msk.f32.gmra.mxu0 %vm355_vm0, %v329_v36 }
  0x5e   : > { %1451 = vmatmul.msk.f32.gmra.mxu1 %vm355_vm0, %v329_v36 }
  0x65   : > { %1436 = vmatmul.msk.f32.gmra.mxu0 %vm355_vm0, %v1803_v9 }
  0x72   : > { %v557_v50 = vpop.permute.xlu2 %556 }
  0x7a   : > { %v562_v57 = vpop.permute.xlu2 %561 }
  0x82   : > { %v577_v0 = vpop.permute.xlu2 %576 }
  0x88   : > { %v537_v45 = vpop.permute.xlu0 %536 }
  0x89   : > { %v547_v47 = vpop.permute.xlu1 %546 }
  0x8a   : > { %v592_v17 = vpop.permute.xlu2 %591 }
  0x91   : > { %v542_v52 = vpop.permute.xlu0 %541  ;;  %v552_v55 = vpop.permute.xlu1 %551 }
  0x99   : > { %v567_v60 = vpop.permute.xlu0 %566  ;;  %v572_v62 = vpop.permute.xlu1 %571 }
  0x9a   : > { %v421_v37 = vpop.f32.mrf.mxu0 }
  0x9b   : > { %v486_v38 = vpop.f32.mrf.mxu1  ;;  %v1954_v23 = vsub.f32 %v537_v45, %v421_v37 }
  0x9c   : > { %v1947_v19 = vsub.f32 %v537_v45, %v486_v38 }
  0xa0   : > { %v1924_v49 = vpop.f32.mrf.mxu2 }
  0xa1   : > { %v513_v40 = vpop.f32.mrf.mxu3  ;;  %v582_v4 = vpop.permute.xlu0 %581 }
  0xa2   : > { %v1920_v39 = vpop.f32.mrf.mxu0  ;;  %v587_v8 = vpop.permute.xlu1 %586  ;;  %v1949_v20 = vsub.f32 %v582_v4, %v513_v40 }
  0xa3   : > { %v489_v41 = vpop.f32.mrf.mxu1  ;;  %v1980_v45 = vsub.f32 %v542_v52, %v1920_v39 }
  0xa4   : > { %v1932_v6 = vsub.f32 %v542_v52, %v489_v41 }
  0xa8   : > { %v1926_v56 = vpop.f32.mrf.mxu2 }
  0xa9   : > { %v1922_v44 = vpop.f32.mrf.mxu3  ;;  %v597_v24 = vpop.permute.xlu0 %596 }
  0xaa   : > { %v427_v42 = vpop.f32.mrf.mxu0  ;;  %v602_v36 = vpop.permute.xlu1 %601 }
  0xab   : > { %v492_v43 = vpop.f32.mrf.mxu1  ;;  %v1945_v16 = vsub.f32 %v547_v47, %v427_v42 }
  0xac   : > { %v1940_v13 = vsub.f32 %v547_v47, %v492_v43 }
  0xad   : > { %v646_v29 = vmin.f32 %v1954_v23, %v1945_v16 }
  0xae   : > { %v667_v26 = vmin.f32 %v1947_v19, %v1940_v13 }
  0xb0   : > { %v1928_v63 = vpop.f32.mrf.mxu2 }
  0xb1   : > { %v519_v51 = vpop.f32.mrf.mxu3 }
  0xb2   : > { %v430_v46 = vpop.f32.mrf.mxu0  ;;  %v1967_v31 = vsub.f32 %v592_v17, %v519_v51 }
  0xb3   : > { %v495_v48 = vpop.f32.mrf.mxu1  ;;  %v1970_v34 = vsub.f32 %v552_v55, %v430_v46 }
  0xb4   : > { %v1930_v5 = vsub.f32 %v552_v55, %v495_v48  ;;  %v1986_v48 = vsub.f32 %v587_v8, %v1922_v44 }
  0xb6   : > { %v668_v9 = vmin.f32 %v1932_v6, %v1930_v5 }
  0xb8   : > { %v1938_v10 = vpop.f32.mrf.mxu2 }
  0xb9   : > { %v522_v58 = vpop.f32.mrf.mxu3 }
  0xba   : > { %v433_v53 = vpop.f32.mrf.mxu0  ;;  %v1996_v52 = vsub.f32 %v597_v24, %v522_v58 }
  0xbb   : > { %v498_v54 = vpop.f32.mrf.mxu1  ;;  %v1956_v25 = vsub.f32 %v557_v50, %v433_v53  ;;  %v647_v53 = vmin.f32 %v1980_v45, %v1970_v34 }
  0xbc   : > { %v1951_v21 = vsub.f32 %v557_v50, %v498_v54  ;;  %v607_v54 = vpop.permute.xlu2 %606 }
  0xbd   : > { %v648_v35 = vmin.f32 %v646_v29, %v1956_v25 }
  0xbe   : > { %v669_v32 = vmin.f32 %v667_v26, %v1951_v21 }
  0xc0   : > { %v463_v40 = vpop.f32.mrf.mxu2 }
  0xc1   : > { %v525_v2 = vpop.f32.mrf.mxu3 }
  0xc2   : > { %v436_v59 = vpop.f32.mrf.mxu0  ;;  %v1988_v50 = vsub.f32 %v602_v36, %v525_v2 }
  0xc3   : > { %v501_v61 = vpop.f32.mrf.mxu1  ;;  %v1982_v47 = vsub.f32 %v562_v57, %v436_v59  ;;  %v2001_v59 = vsub.f32 %v587_v8, %v1924_v49  ;;  %v2016_v8 = vsub.f32 %v597_v24, %v1928_v63 }
  0xc4   : > { %v1934_v7 = vsub.f32 %v562_v57, %v501_v61  ;;  %v612_v61 = vpop.permute.xlu0 %611 }
  0xc6   : > { %v670_v14 = vmin.f32 %v668_v9, %v1934_v7 }
  0xc9   : > { %v528_v18 = vpop.f32.mrf.mxu3 }
  0xca   : > { %v439_v1 = vpop.f32.mrf.mxu0 }
  0xcb   : > { %v504_v3 = vpop.f32.mrf.mxu1  ;;  %v1965_v30 = vsub.f32 %v567_v60, %v439_v1  ;;  %v2004_v1 = vsub.f32 %v607_v54, %v528_v18 }
  0xcc   : > { %v1960_v27 = vsub.f32 %v567_v60, %v504_v3 }
  0xcd   : > { %v650_v46 = vmin.f32 %v648_v35, %v1965_v30 }
  0xce   : > { %v671_v41 = vmin.f32 %v669_v32, %v1960_v27 }
  0xd1   : > { %v531_v55 = vpop.f32.mrf.mxu3 }
  0xd2   : > { %v442_v11 = vpop.f32.mrf.mxu0  ;;  %v2006_v2 = vsub.f32 %v612_v61, %v531_v55 }
  0xd3   : > { %v507_v12 = vpop.f32.mrf.mxu1  ;;  %v1993_v60 = vsub.f32 %v572_v62, %v442_v11 }
  0xd4   : > { %v1943_v15 = vsub.f32 %v572_v62, %v507_v12 }
  0xd6   : > { %v672_v22 = vmin.f32 %v670_v14, %v1943_v15  ;;  %v2019_v14 = vsub.f32 %v592_v17, %v1926_v56  ;;  %v688_v17 = vlaneseq }
  0xd8   : > { %v674_v28 = vmin.f32 %v672_v22, %v1949_v20  ;;  %v466_v22 = vpop.f32.mrf.mxu2 }
  0xd9   : > { %v2029_v35 = vsub.f32 %v612_v61, %v466_v22 }
  0xda   : > { %v445_v33 = vpop.f32.mrf.mxu0  ;;  %v676_v42 = vmin.f32 %v674_v28, %v1967_v31  ;;  %v2023_v28 = vsub.f32 %v602_v36, %v1938_v10 }
  0xdb   : > { %v1973_v37 = vsub.f32 %v577_v0, %v445_v33  ;;  %v510_v38 = vpop.f32.mrf.mxu1  ;;  %v2027_v33 = vsub.f32 %v607_v54, %v463_v40 }
  0xdc   : > { %v1977_v43 = vsub.f32 %v577_v0, %v510_v38  ;;  %v678_v57 = vmin.f32 %v676_v42, %v1988_v50  ;;  %v649_v0 = vmin.f32 %v647_v53, %v1982_v47  ;;  %v2035_v42 = vshrl.u32 %v688_v17, 7 }
  0xdd   : > { %v652_v39 = vmin.f32 %v650_v46, %v1973_v37 }
  0xde   : > { %v673_v51 = vmin.f32 %v671_v41, %v1977_v43  ;;  %v651_v58 = vmin.f32 %v649_v0, %v1993_v60  ;;  %v680_v12 = vmin.f32 %v678_v57, %v2006_v2  ;;  %v2040_v54 = vadd.s32 16, %v2035_v42 }
  0xdf   : > { %v654_v9 = vmin.f32 %v652_v39, %v2001_v59  ;;  %v2043_v55 = vadd.s32 32, %v2035_v42  ;;  %v2046_v39 = vadd.s32 48, %v2035_v42  ;;  %v2049_v57 = vadd.s32 64, %v2035_v42 }
  0xe0   : > { %v675_v44 = vmin.f32 %v673_v51, %v1986_v48  ;;  %v2056_v61 = vadd.s32 80, %v2035_v42  ;;  %v2059_v0 = vadd.s32 96, %v2035_v42 }
  0xe2   : > { %v677_v62 = vmin.f32 %v675_v44, %v1996_v52  ;;  %v448_v3 = vpop.f32.mrf.mxu0 }
  0xe3   : > { %v2011_v11 = vsub.f32 %v582_v4, %v448_v3  ;;  %v656_v4 = vmin.f32 %v654_v9, %v2016_v8  ;;  %v2065_v3 = vadd.s32 8, %v2035_v42  ;;  %v2075_v9 = vadd.s32 40, %v2035_v42 }
  0xe4   : > { %v679_v49 = vmin.f32 %v677_v62, %v2004_v1  ;;  %v2062_v62 = vadd.s32 112, %v2035_v42 }
  0xe5   : > { %v653_v18 = vmin.f32 %v651_v58, %v2011_v11  ;;  %v658_v24 = vmin.f32 %v656_v4, %v2027_v33  ;;  %v2072_v58 = vadd.s32 24, %v2035_v42 }
  0xe6   : > { %v681_v26 = vmin.f32 %v679_v49, %v680_v12  ;;  %v2078_v12 = vadd.s32 56, %v2035_v42  ;;  %v2081_v49 = vadd.s32 72, %v2035_v42 }
  0xe7   : > { %v655_v29 = vmin.f32 %v653_v18, %v2019_v14  ;;  %v2084_v18 = vadd.s32 88, %v2035_v42 }
  0xe8   : > { %v682_v32 = vrot.slane %v681_v26, 4 }
  0xe9   : > { %v657_v63 = vmin.f32 %v655_v29, %v2023_v28 }
  0xea   : > { %v683_v56 = vmin.f32 %v681_v26, %v682_v32  ;;  %v2103_v32 = vadd.s32 104, %v2035_v42 }
  0xeb   : > { %v659_v38 = vmin.f32 %v657_v63, %v2029_v35 }
  0xec   : > { %v684_v41 = vrot.slane %v683_v56, 2 }
  0xed   : > { %v660_v10 = vmin.f32 %v658_v24, %v659_v38 }
  0xee   : > { %v685_v36 = vmin.f32 %v683_v56, %v684_v41 }
  0xef   : > { %v661_v46 = vrot.slane %v660_v10, 4 }
  0xf0   : > { %v686_v51 = vrot.slane %v685_v36, 1 }
  0xf1   : > { %v662_v40 = vmin.f32 %v660_v10, %v661_v46 }
  0xf2   : > { %v2037_v53 = vmin.f32 %v685_v36, %v686_v51 }
  0xf3   : > { %v663_v44 = vrot.slane %v662_v40, 2 }
  0xf4   : > { %vm706_vm1 = vcmp.le.f32.partialorder %v1947_v19, %v2037_v53  ;;  %vm710_vm2 = vcmp.le.f32.partialorder %v1940_v13, %v2037_v53  ;;  %vm714_vm3 = vcmp.le.f32.partialorder %v1951_v21, %v2037_v53  ;;  %vm718_vm4 = vcmp.le.f32.partialorder %v1960_v27, %v2037_v53 }
  0xf5   : > { %v738_v19 = vsel %vm706_vm1, %v2035_v42, 128  ;;  %v742_v13 = vsel %vm710_vm2, %v2040_v54, 128  ;;  %vm722_vm5 = vcmp.le.f32.partialorder %v1977_v43, %v2037_v53  ;;  %v664_v21 = vmin.f32 %v662_v40, %v663_v44 }
  0xf6   : > { %vm808_vm6 = vcmp.lt.s32.totalorder %v738_v19, %v742_v13  ;;  %v746_v22 = vsel %vm714_vm3, %v2043_v55, 128  ;;  %vm708_vm7 = vcmp.le.f32.partialorder %v1932_v6, %v2037_v53  ;;  %vm712_vm8 = vcmp.le.f32.partialorder %v1930_v5, %v2037_v53 }
  0xf7   : > { %v809_v26 = vsel %vm808_vm6, %v738_v19, %v742_v13  ;;  %vm726_vm9 = vcmp.le.f32.partialorder %v1986_v48, %v2037_v53  ;;  %vm730_vm10 = vcmp.le.f32.partialorder %v1996_v52, %v2037_v53  ;;  %v665_v27 = vrot.slane %v664_v21, 1 }
  0xf8   : > { %vm812_vm11 = vcmp.lt.s32.totalorder %v809_v26, %v746_v22  ;;  %vm734_vm12 = vcmp.le.f32.partialorder %v2004_v1, %v2037_v53  ;;  %v750_v4 = vsel %vm718_vm4, %v2046_v39, 128  ;;  %v740_v5 = vsel %vm708_vm7, %v2065_v3, 128 }
  0xf9   : > { %v813_v29 = vsel %vm812_vm11, %v809_v26, %v746_v22  ;;  %v2105_v6 = vmin.f32 %v664_v21, %v665_v27  ;;  %v744_v48 = vsel %vm712_vm8, %v2072_v58, 128  ;;  %v754_v52 = vsel %vm722_vm5, %v2049_v57, 128 }
  0xfa   : > { %vm816_vm13 = vcmp.lt.s32.totalorder %v813_v29, %v750_v4  ;;  %v758_v63 = vsel %vm726_vm9, %v2056_v61, 128  ;;  %v762_v56 = vsel %vm730_vm10, %v2059_v0, 128  ;;  %vm716_vm1 = vcmp.le.f32.partialorder %v1934_v7, %v2037_v53 }
  0xfb   : > { %v817_v24 = vsel %vm816_vm13, %v813_v29, %v750_v4  ;;  %vm707_vm15 = vcmp.le.f32.partialorder %v1980_v45, %v2105_v6  ;;  %vm711_vm0 = vcmp.le.f32.partialorder %v1970_v34, %v2105_v6  ;;  %v766_v43 = vsel %vm734_vm12, %v2062_v62, 128 }
  0xfc   : > { %vm820_vm14 = vcmp.lt.s32.totalorder %v817_v24, %v754_v52  ;;  %vm720_vm2 = vcmp.le.f32.partialorder %v1943_v15, %v2037_v53  ;;  %vm810_vm3 = vcmp.lt.s32.totalorder %v740_v5, %v744_v48  ;;  %vm715_vm5 = vcmp.le.f32.partialorder %v1982_v47, %v2105_v6 }
  0xfd   : > { %v821_v38 = vsel %vm820_vm14, %v817_v24, %v754_v52  ;;  %v739_v45 = vsel %vm707_vm15, %v2065_v3, 128  ;;  %v743_v34 = vsel %vm711_vm0, %v2072_v58, 128  ;;  %vm724_vm6 = vcmp.le.f32.partialorder %v1949_v20, %v2037_v53 }
  0xfe   : > { %vm824_vm4 = vcmp.lt.s32.totalorder %v821_v38, %v758_v63  ;;  %vm728_vm7 = vcmp.le.f32.partialorder %v1967_v31, %v2037_v53  ;;  %v748_v7 = vsel %vm716_vm1, %v2075_v9, 128  ;;  %vm719_vm8 = vcmp.le.f32.partialorder %v1993_v60, %v2105_v6 }
  0xff   : > { %v825_v41 = vsel %vm824_vm4, %v821_v38, %v758_v63  ;;  %vm723_vm9 = vcmp.le.f32.partialorder %v2011_v11, %v2105_v6  ;;  %v752_v15 = vsel %vm720_vm2, %v2078_v12, 128  ;;  %vm771_vm10 = vcmp.lt.s32.totalorder %v739_v45, %v743_v34 }
 0x100   : > { %vm828_vm11 = vcmp.lt.s32.totalorder %v825_v41, %v762_v56  ;;  %v747_v47 = vsel %vm715_vm5, %v2075_v9, 128  ;;  %v772_v1 = vsel %vm771_vm10, %v739_v45, %v743_v34  ;;  %v811_v20 = vsel %vm810_vm3, %v740_v5, %v744_v48 }
 0x101   : > { %v756_v10 = vsel %vm724_vm6, %v2081_v49, 128  ;;  %v760_v31 = vsel %vm728_vm7, %v2084_v18, 128  ;;  %vm775_vm12 = vcmp.lt.s32.totalorder %v772_v1, %v747_v47  ;;  %vm814_vm13 = vcmp.lt.s32.totalorder %v811_v20, %v748_v7 }
 0x102   : > { %vm727_vm14 = vcmp.le.f32.partialorder %v2019_v14, %v2105_v6  ;;  %v751_v60 = vsel %vm719_vm8, %v2078_v12, 128  ;;  %v776_v36 = vsel %vm775_vm12, %v772_v1, %v747_v47  ;;  %v815_v46 = vsel %vm814_vm13, %v811_v20, %v748_v7 }
 0x103   : > { %v829_v51 = vsel %vm828_vm11, %v825_v41, %v762_v56  ;;  %v755_v40 = vsel %vm723_vm9, %v2081_v49, 128  ;;  %vm779_vm15 = vcmp.lt.s32.totalorder %v776_v36, %v751_v60  ;;  %vm818_vm0 = vcmp.lt.s32.totalorder %v815_v46, %v752_v15 }
 0x104   : > { %v780_v44 = vsel %vm779_vm15, %v776_v36, %v751_v60  ;;  %v819_v19 = vsel %vm818_vm0, %v815_v46, %v752_v15  ;;  %vm705_vm1 = vcmp.le.f32.partialorder %v1954_v23, %v2105_v6  ;;  %vm709_vm2 = vcmp.le.f32.partialorder %v1945_v16, %v2105_v6 }
 0x105   : > { %vm731_vm3 = vcmp.le.f32.partialorder %v2023_v28, %v2105_v6  ;;  %vm783_vm4 = vcmp.lt.s32.totalorder %v780_v44, %v755_v40  ;;  %vm822_vm5 = vcmp.lt.s32.totalorder %v819_v19, %v756_v10  ;;  %vm732_vm6 = vcmp.le.f32.partialorder %v1988_v50, %v2037_v53 }
 0x106   : > { %vm832_vm7 = vcmp.lt.s32.totalorder %v829_v51, %v766_v43  ;;  %v759_v11 = vsel %vm727_vm14, %v2084_v18, 128  ;;  %v784_v13 = vsel %vm783_vm4, %v780_v44, %v755_v40  ;;  %v823_v21 = vsel %vm822_vm5, %v819_v19, %v756_v10 }
 0x107   : > { %vm787_vm8 = vcmp.lt.s32.totalorder %v784_v13, %v759_v11  ;;  %vm826_vm9 = vcmp.lt.s32.totalorder %v823_v21, %v760_v31  ;;  %v737_v16 = vsel %vm705_vm1, %v2035_v42, 128  ;;  %v741_v23 = vsel %vm709_vm2, %v2040_v54, 128 }
 0x108   : > { %v2167_v28 = vadd.s32 120, %v2035_v42  ;;  %vm713_vm10 = vcmp.le.f32.partialorder %v1956_v25, %v2105_v6  ;;  %v833_v22 = vsel %vm832_vm7, %v829_v51, %v766_v43  ;;  %v763_v26 = vsel %vm731_vm3, %v2103_v32, 128 }
 0x109   : > { %v788_v27 = vsel %vm787_vm8, %v784_v13, %v759_v11  ;;  %vm736_vm11 = vcmp.le.f32.partialorder %v2006_v2, %v2037_v53  ;;  %vm717_vm12 = vcmp.le.f32.partialorder %v1965_v30, %v2105_v6  ;;  %v764_v14 = vsel %vm732_vm6, %v2103_v32, 128 }
 0x10a   : > { %vm769_vm13 = vcmp.lt.s32.totalorder %v737_v16, %v741_v23  ;;  %v827_v4 = vsel %vm826_vm9, %v823_v21, %v760_v31  ;;  %vm721_vm14 = vcmp.le.f32.partialorder %v1973_v37, %v2105_v6  ;;  %v745_v25 = vsel %vm713_vm10, %v2043_v55, 128 }
 0x10b   : > { %v770_v29 = vsel %vm769_vm13, %v737_v16, %v741_v23  ;;  %vm830_vm15 = vcmp.lt.s32.totalorder %v827_v4, %v764_v14  ;;  %vm791_vm0 = vcmp.lt.s32.totalorder %v788_v27, %v763_v26  ;;  %v768_v2 = vsel %vm736_vm11, %v2167_v28, 128 }
 0x10c   : > { %vm773_vm1 = vcmp.lt.s32.totalorder %v770_v29, %v745_v25  ;;  %v831_v5 = vsel %vm830_vm15, %v827_v4, %v764_v14  ;;  %v749_v30 = vsel %vm717_vm12, %v2046_v39, 128  ;;  %vm725_vm3 = vcmp.le.f32.partialorder %v2001_v59, %v2105_v6 }
 0x10d   : > { %v774_v48 = vsel %vm773_vm1, %v770_v29, %v745_v25  ;;  %vm834_vm2 = vcmp.lt.s32.totalorder %v831_v5, %v768_v2  ;;  %vm735_vm4 = vcmp.le.f32.partialorder %v2029_v35, %v2105_v6  ;;  %v792_v53 = vsel %vm791_vm0, %v788_v27, %v763_v26 }
 0x10e   : > { %vm777_vm5 = vcmp.lt.s32.totalorder %v774_v48, %v749_v30  ;;  %v835_v50 = vsel %vm834_vm2, %v831_v5, %v768_v2  ;;  %v753_v52 = vsel %vm721_vm14, %v2049_v57, 128  ;;  %vm729_vm7 = vcmp.le.f32.partialorder %v2016_v8, %v2105_v6 }
 0x10f   : > { %v778_v63 = vsel %vm777_vm5, %v774_v48, %v749_v30  ;;  %vm836_vm6 = vcmp.lt.s32.totalorder %v833_v22, %v835_v50  ;;  %v757_v59 = vsel %vm725_vm3, %v2056_v61, 128  ;;  %v767_v24 = vsel %vm735_vm4, %v2167_v28, 128 }
 0x110   : > { %vm781_vm8 = vcmp.lt.s32.totalorder %v778_v63, %v753_v52  ;;  %v837_v56 = vsel %vm836_vm6, %v833_v22, %v835_v50  ;;  %vm733_vm9 = vcmp.le.f32.partialorder %v2027_v33, %v2105_v6  ;;  %vm795_vm11 = vcmp.lt.s32.totalorder %v792_v53, %v767_v24 }
 0x111   : > { %v782_v35 = vsel %vm781_vm8, %v778_v63, %v753_v52  ;;  %v838_v43 = vrot.slane %v837_v56, 4  ;;  %v761_v37 = vsel %vm729_vm7, %v2059_v0, 128  ;;  %v765_v8 = vsel %vm733_vm9, %v2062_v62, 128 }
 0x112   : > { %vm785_vm10 = vcmp.lt.s32.totalorder %v782_v35, %v757_v59  ;;  %v796_v41 = vsel %vm795_vm11, %v792_v53, %v767_v24  ;;  %v1685_v60 = vmov 1.0   ;;  %v1686_v40 = vmov 0.0  }
 0x113   : > { %v786_v38 = vsel %vm785_vm10, %v782_v35, %v757_v59  ;;  %vm839_vm12 = vcmp.lt.s32.totalorder %v837_v56, %v838_v43 }
 0x114   : > { %vm789_vm13 = vcmp.lt.s32.totalorder %v786_v38, %v761_v37  ;;  %v840_v45 = vsel %vm839_vm12, %v837_v56, %v838_v43 }
 0x115   : > { %v790_v34 = vsel %vm789_vm13, %v786_v38, %v761_v37  ;;  %v841_v7 = vrot.slane %v840_v45, 2 }
 0x116   : > { %vm793_vm14 = vcmp.lt.s32.totalorder %v790_v34, %v765_v8 }
 0x117   : > { %v794_v15 = vsel %vm793_vm14, %v790_v34, %v765_v8  ;;  %vm842_vm15 = vcmp.lt.s32.totalorder %v840_v45, %v841_v7 }
 0x118   : > { %vm797_vm0 = vcmp.lt.s32.totalorder %v794_v15, %v796_v41  ;;  %v843_v47 = vsel %vm842_vm15, %v840_v45, %v841_v7 }
 0x119   : > { %v798_v1 = vsel %vm797_vm0, %v794_v15, %v796_v41  ;;  %v844_v33 = vrot.slane %v843_v47, 1 }
 0x11a   : > { %v799_v6 = vrot.slane %v798_v1, 4 }
 0x11b   : > { %vm845_vm1 = vcmp.lt.s32.totalorder %v843_v47, %v844_v33 }
 0x11c   : > { %vm800_vm2 = vcmp.lt.s32.totalorder %v798_v1, %v799_v6  ;;  %v2201_v20 = vsel %vm845_vm1, %v843_v47, %v844_v33 }
 0x11d   : > { %v801_v10 = vsel %vm800_vm2, %v798_v1, %v799_v6  ;;  %vm878_vm3 = vcmp.eq.s32.totalorder %v2167_v28, %v2201_v20  ;;  %vm2718_vm4 = vcmp.eq.s32.totalorder %v2062_v62, %v2201_v20  ;;  %vm2721_vm6 = vcmp.eq.s32.totalorder %v2103_v32, %v2201_v20 }
 0x11e   : > { %v802_v31 = vrot.slane %v801_v10, 2  ;;  %1507 = vmatpush.msk.msrb.mxu3 %vm878_vm3, %v1685_v60  ;;  %vm860_vm7 = vcmp.eq.s32.totalorder %v2046_v39, %v2201_v20  ;;  %vm2729_vm8 = vcmp.eq.s32.totalorder %v2072_v58, %v2201_v20  ;;  %vm872_vm9 = vcmp.eq.s32.totalorder %v2059_v0, %v2201_v20 }
 0x11f   : > { %vm2726_vm10 = vcmp.eq.s32.totalorder %v2065_v3, %v2201_v20  ;;  %vm2719_vm12 = vcmp.eq.s32.totalorder %v2084_v18, %v2201_v20  ;;  %vm856_vm13 = vcmp.eq.s32.totalorder %v2043_v55, %v2201_v20  ;;  %vm2722_vm14 = vcmp.eq.s32.totalorder %v2035_v42, %v2201_v20 }
 0x120   : > { %vm803_vm5 = vcmp.lt.s32.totalorder %v801_v10, %v802_v31  ;;  %1508 = vmatpush.msk.msrb.mxu3 %vm2718_vm4, %v1685_v60  ;;  %v1462_v44 = vsel %vm2726_vm10, 1.0, %v1686_v40  ;;  %v1466_v19 = vsel %vm2729_vm8, 1.0, %v1686_v40  ;;  %v1472_v11 = vsel %vm860_vm7, 1.0, %v1686_v40 }
 0x121   : > { %v804_v36 = vsel %vm803_vm5, %v801_v10, %v802_v31  ;;  %vm2728_vm0 = vcmp.eq.s32.totalorder %v2056_v61, %v2201_v20  ;;  %v1468_v21 = vsel %vm856_vm13, 1.0, %v1686_v40  ;;  %v1460_v23 = vsel %vm2722_vm14, 1.0, %v1686_v40 }
 0x122   : > { %v805_v46 = vrot.slane %v804_v36, 1  ;;  %1509 = vmatpush.msk.msrb.mxu3 %vm2721_vm6, %v1685_v60  ;;  %vm866_vm6 = vcmp.eq.s32.totalorder %v2081_v49, %v2201_v20  ;;  %vm852_vm14 = vcmp.eq.s32.totalorder %v2040_v54, %v2201_v20  ;;  %v1484_v35 = vsel %vm872_vm9, 1.0, %v1686_v40 }
 0x123   : > { %v1464_v25 = vsel %vm852_vm14, 1.0, %v1686_v40  ;;  %v1478_v56 = vsel %vm866_vm6, 1.0, %v1686_v40  ;;  %v1490_v38 = vsel %vm878_vm3, 1.0, %v1686_v40 }
 0x124   : > { %vm806_vm11 = vcmp.lt.s32.totalorder %v804_v36, %v805_v46  ;;  %1510 = vmatpush.msk.msrb.mxu3 %vm872_vm9, %v1685_v60 }
 0x125   : > { %v2239_v51 = vsel %vm806_vm11, %v804_v36, %v805_v46  ;;  %vm862_vm11 = vcmp.eq.s32.totalorder %v2078_v12, %v2201_v20 }
 0x126   : > { %vm877_vm15 = vcmp.eq.s32.totalorder %v2167_v28, %v2239_v51  ;;  %1511 = vmatpush.msk.msrb.mxu3 %vm2719_vm12, %v1685_v60  ;;  %vm2725_vm1 = vcmp.eq.s32.totalorder %v2043_v55, %v2239_v51  ;;  %vm2720_vm2 = vcmp.eq.s32.totalorder %v2035_v42, %v2239_v51  ;;  %vm2723_vm5 = vcmp.eq.s32.totalorder %v2062_v62, %v2239_v51 }
 0x127   : > { %1491 = vmatpush.msk.msrb.mxu2 %vm877_vm15, %v1685_v60  ;;  %v1467_v13 = vsel %vm2725_vm1, 1.0, %v1686_v40  ;;  %v1459_v16 = vsel %vm2720_vm2, 1.0, %v1686_v40  ;;  %vm2730_vm4 = vcmp.eq.s32.totalorder %v2078_v12, %v2239_v51  ;;  %vm2727_vm12 = vcmp.eq.s32.totalorder %v2040_v54, %v2239_v51 }
 0x128   : > { %1512 = vmatpush.msk.msrb.mxu3 %vm2728_vm0, %v1685_v60  ;;  %v1029_v22 = vadd.f32 %v1468_v21, %v1467_v13  ;;  %v1017_v26 = vadd.f32 %v1460_v23, %v1459_v16  ;;  %vm2724_vm2 = vcmp.eq.s32.totalorder %v2103_v32, %v2239_v51  ;;  %v1473_v27 = vsel %vm2730_vm4, 1.0, %v1686_v40 }
 0x129   : > { %1492 = vmatpush.msk.msrb.mxu2 %vm2723_vm5, %v1685_v60  ;;  %vm2731_vm5 = vcmp.eq.s32.totalorder %v2049_v57, %v2201_v20  ;;  %v1474_v14 = vsel %vm862_vm11, 1.0, %v1686_v40  ;;  %v1463_v4 = vsel %vm2727_vm12, 1.0, %v1686_v40  ;;  %vm859_vm1 = vcmp.eq.s32.totalorder %v2046_v39, %v2239_v51  ;;  %v337_v39 = vld [vmem:[%s2714_s2] sm:$0xff] }
 0x12a   : > { %1030 = vadd.xlane.f32.xlu0 %v1029_v22  ;;  %1018 = vadd.xlane.f32.xlu1 %v1017_v26  ;;  %vm853_vm10 = vcmp.eq.s32.totalorder %v2072_v58, %v2239_v51  ;;  %vm865_vm12 = vcmp.eq.s32.totalorder %v2081_v49, %v2239_v51  ;;  %vm858_vm0 = vcmp.eq.s32.totalorder %v2075_v9, %v2201_v20  ;;  %v1471_v50 = vsel %vm859_vm1, 1.0, %v1686_v40 }
 0x12b   : > { %1493 = vmatpush.msk.msrb.mxu2 %vm2724_vm2, %v1685_v60  ;;  %1513 = vmatpush.msk.msrb.mxu3 %vm866_vm6, %v1685_v60  ;;  %vm871_vm2 = vcmp.eq.s32.totalorder %v2059_v0, %v2239_v51  ;;  %vm849_vm8 = vcmp.eq.s32.totalorder %v2065_v3, %v2239_v51  ;;  %vm869_vm4 = vcmp.eq.s32.totalorder %v2084_v18, %v2239_v51  ;;  %v1465_v48 = vsel %vm853_vm10, 1.0, %v1686_v40 }
 0x12c   : > { %v1038_v29 = vadd.f32 %v1474_v14, %v1473_v27  ;;  %v1461_v2 = vsel %vm849_vm8, 1.0, %v1686_v40  ;;  %v1023_v5 = vadd.f32 %v1464_v25, %v1463_v4  ;;  %v2379_v53 = vadd.f32 %v1466_v19, %v1465_v48 }
 0x12d   : > { %1494 = vmatpush.msk.msrb.mxu2 %vm871_vm2, %v1685_v60  ;;  %1514 = vmatpush.msk.msrb.mxu3 %vm2731_vm5, %v1685_v60  ;;  %vm867_vm5 = vcmp.eq.s32.totalorder %v2056_v61, %v2239_v51  ;;  %v2369_v30 = vadd.f32 %v1462_v44, %v1461_v2  ;;  %v2381_v52 = vadd.f32 %v1472_v11, %v1471_v50  ;;  %v1477_v63 = vsel %vm865_vm12, 1.0, %v1686_v40 }
 0x12e   : > { %v2399_v59 = vadd.f32 %v1478_v56, %v1477_v63  ;;  %v1483_v24 = vsel %vm871_vm2, 1.0, %v1686_v40  ;;  %v1489_v43 = vsel %vm877_vm15, 1.0, %v1686_v40  ;;  %vm857_vm6 = vcmp.eq.s32.totalorder %v2075_v9, %v2239_v51  ;;  %v1600_v56 = vld [vmem:[%s1788_s15 + $0x8] sm:$0xff] }
 0x12f   : > { %1495 = vmatpush.msk.msrb.mxu2 %vm869_vm4, %v1685_v60  ;;  %1515 = vmatpush.msk.msrb.mxu3 %vm862_vm11, %v1685_v60  ;;  %v2415_v37 = vadd.f32 %v1484_v35, %v1483_v24  ;;  %v2431_v0 = vadd.f32 %v1490_v38, %v1489_v43  ;;  %vm863_vm9 = vcmp.eq.s32.totalorder %v2049_v57, %v2239_v51  ;;  %v1479_v49 = vsel %vm867_vm5, 1.0, %v1686_v40  ;;  %v1601_v38 = vld [vmem:[%s1788_s15] sm:$0xff] }
 0x130   : > { %v1469_v28 = vsel %vm857_vm6, 1.0, %v1686_v40  ;;  %vm2734_vm3 = vcmp.eq.s32.totalorder %v2078_v12, %v2239_v51  ;;  %v1470_v8 = vsel %vm858_vm0, 1.0, %v1686_v40  ;;  %vm2737_vm15 = vcmp.eq.s32.totalorder %v2065_v3, %v2201_v20 }
 0x131   : > { %1496 = vmatpush.msk.msrb.mxu2 %vm867_vm5, %v1685_v60  ;;  %1516 = vmatpush.msk.msrb.mxu3 %vm860_vm7, %v1685_v60  ;;  %vm298_vm7 = vcmask 7168   ;;  %v1032_v34 = vadd.f32 %v1470_v8, %v1469_v28  ;;  %v1475_v9 = vsel %vm863_vm9, 1.0, %v1686_v40  ;;  %vm2741_vm2 = vcmp.eq.s32.totalorder %v2103_v32, %v2201_v20 }
 0x132   : > { %1039 = vadd.xlane.f32.xlu0 %v1038_v29  ;;  %1024 = vadd.xlane.f32.xlu1 %v1023_v5  ;;  %305 = vst.msk [vmem:[#allocation3 + $0x20] sm:$0xff] %vm298_vm7, %v1686_v40  ;;  %vm2742_vm5 = vcmp.eq.s32.totalorder %v2049_v57, %v2201_v20  ;;  %v338_v57 = vld [vmem:[%s2714_s2 + $0x8] sm:$0xff]  ;;  %vm2744_vm11 = vcmp.eq.s32.totalorder %v2035_v42, %v2239_v51 }
 0x133   : > { %1497 = vmatpush.msk.msrb.mxu2 %vm865_vm12, %v1685_v60  ;;  %1517 = vmatpush.msk.msrb.mxu3 %vm858_vm0, %v1685_v60  ;;  %299 = vst.msk [vmem:[#allocation2] sm:$0xff] %vm298_vm7, %v1686_v40  ;;  %vm2735_vm12 = vcmp.eq.s32.totalorder %v2072_v58, %v2201_v20  ;;  %vm2739_vm0 = vcmp.eq.s32.totalorder %v2035_v42, %v2201_v20  ;;  %v1476_v41 = vsel %vm2742_vm5, 1.0, %v1686_v40 }
 0x134   : > { %300 = vst.msk [vmem:[#allocation2 + $0x8] sm:$0xff] %vm298_vm7, %v1686_v40  ;;  %v1041_v15 = vadd.f32 %v1476_v41, %v1475_v9 }
 0x135   : > { %1498 = vmatpush.msk.msrb.mxu2 %vm863_vm9, %v1685_v60  ;;  %1518 = vmatpush.msk.msrb.mxu3 %vm856_vm13, %v1685_v60  ;;  %301 = vst.msk [vmem:[#allocation3] sm:$0xff] %vm298_vm7, %v1686_v40  ;;  %vm2736_vm13 = vcmp.eq.s32.totalorder %v2056_v61, %v2201_v20  ;;  %vm2747_vm9 = vcmp.eq.s32.totalorder %v2062_v62, %v2201_v20 }
 0x136   : > { %v1480_v45 = vsel %vm2736_vm13, 1.0, %v1686_v40  ;;  %302 = vst.msk [vmem:[#allocation3 + $0x8] sm:$0xff] %vm298_vm7, %v1686_v40 }
 0x137   : > { %1499 = vmatpush.msk.msrb.mxu2 %vm2734_vm3, %v1685_v60  ;;  %1519 = vmatpush.msk.msrb.mxu3 %vm2735_vm12, %v1685_v60  ;;  %v1047_v12 = vadd.f32 %v1480_v45, %v1479_v49  ;;  %303 = vst.msk [vmem:[#allocation3 + $0x10] sm:$0xff] %vm298_vm7, %v1686_v40 }
 0x138   : > { %304 = vst.msk [vmem:[#allocation3 + $0x18] sm:$0xff] %vm298_vm7, %v1686_v40 }
 0x139   : > { %1500 = vmatpush.msk.msrb.mxu2 %vm859_vm1, %v1685_v60  ;;  %1520 = vmatpush.msk.msrb.mxu3 %vm852_vm14, %v1685_v60  ;;  %306 = vst.msk [vmem:[#allocation3 + $0x28] sm:$0xff] %vm298_vm7, %v1686_v40  ;;  %vm2738_vm14 = vcmp.eq.s32.totalorder %v2043_v55, %v2239_v51  ;;  %vm2740_vm1 = vcmp.eq.s32.totalorder %v2103_v32, %v2239_v51  ;;  %v1486_v55 = vsel %vm2741_vm2, 1.0, %v1686_v40  ;;  %v1488_v32 = vsel %vm2747_vm9, 1.0, %v1686_v40  ;;  %v1005_v1 = vld [vmem:[#allocation3 + $0x20] sm:$0xff] }
 0x13a   : > { %1048 = vadd.xlane.f32.xlu0 %v1047_v12  ;;  %1033 = vadd.xlane.f32.xlu1 %v1032_v34  ;;  %307 = vst.msk [vmem:[#allocation3 + $0x30] sm:$0xff] %vm298_vm7, %v1686_v40  ;;  %v1485_v61 = vsel %vm2740_vm1, 1.0, %v1686_v40  ;;  %v1602_v12 = vld [vmem:[%s1788_s15 + $0x18] sm:$0xff] }
 0x13b   : > { %1501 = vmatpush.msk.msrb.mxu2 %vm857_vm6, %v1685_v60  ;;  %1521 = vmatpush.msk.msrb.mxu3 %vm2737_vm15, %v1685_v60  ;;  %308 = vst.msk [vmem:[#allocation3 + $0x38] sm:$0xff] %vm298_vm7, %v1686_v40  ;;  %v1056_v7 = vadd.f32 %v1486_v55, %v1485_v61  ;;  %vm2746_vm6 = vcmp.eq.s32.totalorder %v2062_v62, %v2239_v51  ;;  %v1603_v61 = vld [vmem:[%s1788_s15 + $0x10] sm:$0xff]  ;;  %s1287_s15 = sshll.u32 %s2591_s17, 4  ;;  %s1288_s15 = int_to_ptr.vmem [resolvable:$true] %s1287_s15 }
 0x13c   : > { %309 = vst.msk [vmem:[#allocation3 + $0x40] sm:$0xff] %vm298_vm7, %v1686_v40  ;;  %v1487_v42 = vsel %vm2746_vm6, 1.0, %v1686_v40  ;;  %v1001_v33 = vld [vmem:[#allocation3] sm:$0xff] }
 0x13d   : > { %1502 = vmatpush.msk.msrb.mxu2 %vm2738_vm14, %v1685_v60  ;;  %1522 = vmatpush.msk.msrb.mxu3 %vm2739_vm0, %v1685_v60  ;;  %310 = vst.msk [vmem:[#allocation3 + $0x48] sm:$0xff] %vm298_vm7, %v1686_v40  ;;  %v1059_v47 = vadd.f32 %v1488_v32, %v1487_v42 }
 0x13e   : > { %982 = vmatmul.f32.vlgmr.msrb.gmra.mxu3 %v337_v39  ;;  %311 = vst.msk [vmem:[#allocation3 + $0x50] sm:$0xff] %vm298_vm7, %v1686_v40  ;;  %v1003_v36 = vld [vmem:[#allocation3 + $0x10] sm:$0xff] }
 0x13f   : > { %1503 = vmatpush.msk.msrb.mxu2 %vm853_vm10, %v1685_v60  ;;  %312 = vst.msk [vmem:[#allocation3 + $0x58] sm:$0xff] %vm298_vm7, %v1686_v40  ;;  %vm2743_vm10 = vcmp.eq.s32.totalorder %v2040_v54, %v2239_v51  ;;  %v1481_v54 = vsel %vm869_vm4, 1.0, %v1686_v40 }
 0x140   : > { %313 = vst.msk [vmem:[#allocation3 + $0x60] sm:$0xff] %vm298_vm7, %v1686_v40 }
 0x141   : > { %1504 = vmatpush.msk.msrb.mxu2 %vm2743_vm10, %v1685_v60  ;;  %314 = vst.msk [vmem:[#allocation3 + $0x68] sm:$0xff] %vm298_vm7, %v1686_v40 }
 0x142   : > { %1057 = vadd.xlane.f32.xlu0 %v1056_v7  ;;  %1042 = vadd.xlane.f32.xlu1 %v1041_v15  ;;  %315 = vst.msk [vmem:[#allocation3 + $0x70] sm:$0xff] %vm298_vm7, %v1686_v40 }
 0x143   : > { %1505 = vmatpush.msk.msrb.mxu2 %vm849_vm8, %v1685_v60  ;;  %316 = vst.msk [vmem:[#allocation3 + $0x78] sm:$0xff] %vm298_vm7, %v1686_v40  ;;  %vm2745_vm8 = vcmp.eq.s32.totalorder %v2084_v18, %v2201_v20  ;;  %v1009_v22 = vld [vmem:[#allocation3 + $0x40] sm:$0xff] }
 0x144   : > { %v1482_v3 = vsel %vm2745_vm8, 1.0, %v1686_v40  ;;  %v1006_v40 = vld [vmem:[#allocation3 + $0x28] sm:$0xff] }
 0x145   : > { %1506 = vmatpush.msk.msrb.mxu2 %vm2744_vm11, %v1685_v60  ;;  %v1050_v58 = vadd.f32 %v1482_v3, %v1481_v54  ;;  %v1008_v60 = vld [vmem:[#allocation3 + $0x38] sm:$0xff]  ;;  %v1011_v20 = vld [vmem:[#allocation3 + $0x50] sm:$0xff] }
 0x146   : > { %959 = vmatmul.f32.vlgmr.msrb.gmra.mxu2 %v337_v39  ;;  %985 = vmatmul.f32.gmra.mxu3 %v338_v57  ;;  %v1012_v25 = vld [vmem:[#allocation3 + $0x58] sm:$0xff] }
 0x148   : > { %v1014_v23 = vld [vmem:[#allocation3 + $0x68] sm:$0xff] }
 0x149   : > { %v1015_v48 = vld [vmem:[#allocation3 + $0x70] sm:$0xff] }
 0x14a   : > { %1051 = vadd.xlane.f32.xlu1 %v1050_v58  ;;  %v1002_v58 = vld [vmem:[#allocation3 + $0x8] sm:$0xff] }
 0x14e   : > { %962 = vmatmul.f32.gmra.mxu2 %v338_v57  ;;  %v1098_v57 = vld [vmem:[#allocation2] sm:$0xff] }
 0x152   : > { %1060 = vadd.xlane.f32.xlu1 %v1059_v47 }
 0x19d   : > { %v1031_v6 = vpop.xlane.xlu0 %1030  ;;  %v1019_v18 = vpop.xlane.xlu1 %1018 }
 0x19e   : > { %v1069_v10 = vadd.f32 %v1031_v6, %v1005_v1  ;;  %v1065_v31 = vadd.f32 %v1019_v18, %v1001_v33 }
 0x1a0   : > { %1086 = vst.msk [vmem:[#allocation3 + $0x20] sm:$0xff] %vm298_vm7, %v1069_v10 }
 0x1a1   : > { %1082 = vst.msk [vmem:[#allocation3] sm:$0xff] %vm298_vm7, %v1065_v31  ;;  %v1007_v31 = vld [vmem:[#allocation3 + $0x30] sm:$0xff] }
 0x1a5   : > { %v1040_v46 = vpop.xlane.xlu0 %1039  ;;  %v1025_v51 = vpop.xlane.xlu1 %1024 }
 0x1a6   : > { %v1072_v44 = vadd.f32 %v1040_v46, %v1008_v60  ;;  %v1067_v19 = vadd.f32 %v1025_v51, %v1003_v36 }
 0x1a8   : > { %1089 = vst.msk [vmem:[#allocation3 + $0x38] sm:$0xff] %vm298_vm7, %v1072_v44  ;;  %v1130_v62 = vld [vmem:[#allocation3] sm:$0xff]  ;;  %v1010_v44 = vld [vmem:[#allocation3 + $0x48] sm:$0xff] }
 0x1a9   : > { %1084 = vst.msk [vmem:[#allocation3 + $0x10] sm:$0xff] %vm298_vm7, %v1067_v19  ;;  %1151 = vperm.xlu1 %1598, %v1130_v62  }
 0x1ad   : > { %v1049_v11 = vpop.xlane.xlu0 %1048  ;;  %v1034_v13 = vpop.xlane.xlu1 %1033 }
 0x1ae   : > { %v1075_v21 = vadd.f32 %v1049_v11, %v1011_v20  ;;  %v1070_v16 = vadd.f32 %v1034_v13, %v1006_v40  ;;  %v1013_v11 = vld [vmem:[#allocation3 + $0x60] sm:$0xff] }
 0x1b0   : > { %1092 = vst.msk [vmem:[#allocation3 + $0x50] sm:$0xff] %vm298_vm7, %v1075_v21  ;;  %v1132_v15 = vld [vmem:[#allocation3 + $0x10] sm:$0xff] }
 0x1b1   : > { %1087 = vst.msk [vmem:[#allocation3 + $0x28] sm:$0xff] %vm298_vm7, %v1070_v16  ;;  %v1134_v16 = vld [vmem:[#allocation3 + $0x20] sm:$0xff] }
 0x1b5   : > { %v1058_v26 = vpop.xlane.xlu0 %1057  ;;  %v1043_v27 = vpop.xlane.xlu1 %1042 }
 0x1b6   : > { %v1078_v14 = vadd.f32 %v1058_v26, %v1014_v23  ;;  %v1073_v4 = vadd.f32 %v1043_v27, %v1009_v22  ;;  %v1016_v26 = vld [vmem:[#allocation3 + $0x78] sm:$0xff] }
 0x1b8   : > { %1095 = vst.msk [vmem:[#allocation3 + $0x68] sm:$0xff] %vm298_vm7, %v1078_v14  ;;  %v1135_v51 = vld [vmem:[#allocation3 + $0x28] sm:$0xff] }
 0x1b9   : > { %1090 = vst.msk [vmem:[#allocation3 + $0x40] sm:$0xff] %vm298_vm7, %v1073_v4  ;;  %v1137_v4 = vld [vmem:[#allocation3 + $0x38] sm:$0xff] }
 0x1bd   : > { %v1052_v29 = vpop.xlane.xlu1 %1051 }
 0x1be   : > { %v1076_v2 = vadd.f32 %v1052_v29, %v1012_v25 }
 0x1c0   : > { %1093 = vst.msk [vmem:[#allocation3 + $0x58] sm:$0xff] %vm298_vm7, %v1076_v2  ;;  %v1138_v40 = vld [vmem:[#allocation3 + $0x40] sm:$0xff]  ;;  %v1140_v2 = vld [vmem:[#allocation3 + $0x50] sm:$0xff] }
 0x1c1   : > { %v983_v5 = vpop.f32.mrf.mxu3 }
 0x1c2   : > { %990 = vst [vmem:[%s2591_s17 + $0x8] sm:$0xff] %v983_v5  ;;  %v994_v24 = vsub.f32 %v983_v5, %v1600_v56 }
 0x1c4   : > { %v998_v28 = vmul.f32 %v994_v24, %v994_v24 }
 0x1c5   : > { %v1061_v50 = vpop.xlane.xlu1 %1060 }
 0x1c6   : > { %v1079_v63 = vadd.f32 %v1061_v50, %v1015_v48  ;;  %v1143_v48 = vld [vmem:[#allocation3 + $0x68] sm:$0xff] }
 0x1c7   : > { %v1141_v22 = vld [vmem:[#allocation3 + $0x58] sm:$0xff] }
 0x1c8   : > { %1096 = vst.msk [vmem:[#allocation3 + $0x70] sm:$0xff] %vm298_vm7, %v1079_v63 }
 0x1c9   : > { %v960_v35 = vpop.f32.mrf.mxu2  ;;  %v986_v43 = vpop.f32.mrf.mxu3 }
 0x1ca   : > { %989 = vst [vmem:[%s2591_s17] sm:$0xff] %v960_v35  ;;  %v993_v49 = vsub.f32 %v960_v35, %v1601_v38  ;;  %v996_v34 = vsub.f32 %v986_v43, %v1602_v12 }
 0x1cb   : > { %992 = vst [vmem:[%s2591_s17 + $0x18] sm:$0xff] %v986_v43 }
 0x1cc   : > { %v997_v45 = vmul.f32 %v993_v49, %v993_v49  ;;  %v1000_v55 = vmul.f32 %v996_v34, %v996_v34 }
 0x1ce   : > { %v1100_v8 = vadd.f32 %v998_v28, %v997_v45 }
 0x1cf   : > { %v1144_v29 = vld [vmem:[#allocation3 + $0x70] sm:$0xff] }
 0x1d0   : > { %1101 = vadd.xlane.f32.xlu2 %v1100_v8 }
 0x1d1   : > { %v963_v39 = vpop.f32.mrf.mxu2 }
 0x1d2   : > { %991 = vst [vmem:[%s2591_s17 + $0x10] sm:$0xff] %v963_v39  ;;  %v995_v9 = vsub.f32 %v963_v39, %v1603_v61 }
 0x1d4   : > { %v999_v41 = vmul.f32 %v995_v9, %v995_v9 }
 0x1d6   : > { %v1103_v7 = vadd.f32 %v1000_v55, %v999_v41 }
 0x1d8   : > { %1021 = vadd.xlane.f32.xlu2 %v2369_v30  ;;  %1104 = vadd.xlane.f32.xlu0 %v1103_v7  ;;  %v1099_v30 = vld [vmem:[#allocation2 + $0x8] sm:$0xff] }
 0x1e0   : > { %1027 = vadd.xlane.f32.xlu2 %v2379_v53 }
 0x1e8   : > { %1036 = vadd.xlane.f32.xlu2 %v2381_v52  ;;  %v1004_v52 = vld [vmem:[#allocation3 + $0x18] sm:$0xff] }
 0x1ec   : > { %1161 = vperm.xlu0 %1597, %v1132_v15  }
 0x1f0   : > { %1045 = vadd.xlane.f32.xlu2 %v2399_v59 }
 0x1f8   : > { %1054 = vadd.xlane.f32.xlu2 %v2415_v37 }
 0x200   : > { %1063 = vadd.xlane.f32.xlu2 %v2431_v0 }
 0x243   : > { %v1102_v54 = vpop.xlane.xlu2 %1101 }
 0x244   : > { %v1106_v3 = vadd.f32 %v1102_v54, %v1098_v57 }
 0x246   : > { %1108 = vst.msk [vmem:[#allocation2] sm:$0xff] %vm298_vm7, %v1106_v3 }
 0x24b   : > { %v1022_v42 = vpop.xlane.xlu2 %1021  ;;  %v1105_v32 = vpop.xlane.xlu0 %1104 }
 0x24c   : > { %v1066_v53 = vadd.f32 %v1022_v42, %v1002_v58  ;;  %v1107_v47 = vadd.f32 %v1105_v32, %v1099_v30 }
 0x24d   : > { %v1113_v1 = vld [vmem:[#allocation2] sm:$0xff] }
 0x24e   : > { %1083 = vst.msk [vmem:[#allocation3 + $0x8] sm:$0xff] %vm298_vm7, %v1066_v53  ;;  %v1115_v6 = vsel %vm298_vm7, %v1113_v1, 0.0 }
 0x24f   : > { %1109 = vst.msk [vmem:[#allocation2 + $0x8] sm:$0xff] %vm298_vm7, %v1107_v47 }
 0x253   : > { %v1028_v59 = vpop.xlane.xlu2 %1027 }
 0x254   : > { %v1068_v37 = vadd.f32 %v1028_v59, %v1004_v52 }
 0x255   : > { %v1131_v0 = vld [vmem:[#allocation3 + $0x8] sm:$0xff] }
 0x256   : > { %1085 = vst.msk [vmem:[#allocation3 + $0x18] sm:$0xff] %vm298_vm7, %v1068_v37  ;;  %1156 = vperm.xlu2 %1599, %v1131_v0   ;;  %v1114_v33 = vld [vmem:[#allocation2 + $0x8] sm:$0xff] }
 0x257   : > { %v1116_v18 = vsel %vm298_vm7, %v1114_v33, 0.0 }
 0x258   : > { %v1117_v10 = vadd.f32 %v1116_v18, %v1115_v6 }
 0x25a   : > { %1118 = vadd.xlane.f32.xlu0 %v1117_v10 }
 0x25b   : > { %v1037_v60 = vpop.xlane.xlu2 %1036 }
 0x25c   : > { %v1071_v36 = vadd.f32 %v1037_v60, %v1007_v31 }
 0x25d   : > { %v1133_v46 = vld [vmem:[#allocation3 + $0x18] sm:$0xff] }
 0x25e   : > { %1088 = vst.msk [vmem:[#allocation3 + $0x30] sm:$0xff] %vm298_vm7, %v1071_v36  ;;  %1166 = vperm.xlu1 %1598, %v1133_v46   ;;  %1176 = vperm.xlu2 %1599, %v1135_v51  }
 0x263   : > { %v1046_v19 = vpop.xlane.xlu2 %1045 }
 0x264   : > { %v1074_v62 = vadd.f32 %v1046_v19, %v1010_v44 }
 0x265   : > { %v1136_v20 = vld [vmem:[#allocation3 + $0x30] sm:$0xff] }
 0x266   : > { %1091 = vst.msk [vmem:[#allocation3 + $0x48] sm:$0xff] %vm298_vm7, %v1074_v62  ;;  %1181 = vperm.xlu1 %1598, %v1136_v20   ;;  %1191 = vperm.xlu2 %1599, %v1138_v40  }
 0x26b   : > { %v1055_v13 = vpop.xlane.xlu2 %1054 }
 0x26c   : > { %v1077_v21 = vadd.f32 %v1055_v13, %v1013_v11 }
 0x26d   : > { %v1139_v23 = vld [vmem:[#allocation3 + $0x48] sm:$0xff] }
 0x26e   : > { %1094 = vst.msk [vmem:[#allocation3 + $0x60] sm:$0xff] %vm298_vm7, %v1077_v21  ;;  %1171 = vperm.xlu0 %1597, %v1134_v16   ;;  %1196 = vperm.xlu1 %1598, %v1139_v23  }
 0x26f   : > { %1206 = vperm.xlu2 %1599, %v1141_v22  }
 0x273   : > { %v1064_v27 = vpop.xlane.xlu2 %1063 }
 0x274   : > { %v1080_v14 = vadd.f32 %v1064_v27, %v1016_v26 }
 0x275   : > { %v1142_v25 = vld [vmem:[#allocation3 + $0x60] sm:$0xff] }
 0x276   : > { %1097 = vst.msk [vmem:[#allocation3 + $0x78] sm:$0xff] %vm298_vm7, %v1080_v14  ;;  %1186 = vperm.xlu0 %1597, %v1137_v4   ;;  %1211 = vperm.xlu1 %1598, %v1142_v25  }
 0x277   : > { %1221 = vperm.xlu2 %1599, %v1144_v29  }
 0x27d   : > { %v1145_v5 = vld [vmem:[#allocation3 + $0x78] sm:$0xff] }
 0x27e   : > { %1201 = vperm.xlu0 %1597, %v1140_v2   ;;  %1226 = vperm.xlu1 %1598, %v1145_v5  }
 0x286   : > { %1216 = vperm.xlu0 %1597, %v1143_v48  }
 0x287   : > { %1631 = shalt.err (!%p1628_p5)
}
 0x288   : > { %s1687_s14 = smov 256   ;;  %s1688_s24 = smov 16   ;;  %v1162_v50 = vpop.permute.xlu0 %1161  ;;  %v1152_v28 = vpop.permute.xlu1 %1151  ;;  %v1128_v41 = vand.u32 127, %v688_v17  ;;  %vm1245_vm3 = vcmask 64512  }
 0x289   : > { %1537 = dma.vmem_to_hbm [thread:$0]  (%p1759_p4), %s1288_s15, 512, %s1290_s7, %s1263_s8, %s1687_s14, %s1687_s14, %s1688_s24  }
 0x28a   : > { %s1529_s28 = sshll.u32 %s1779_s9, 7  ;;  %vm1146_vm4 = vcmp.eq.s32.totalorder %v1128_v41, 1  ;;  %vm1129_vm7 = vcmp.eq.s32.totalorder %v1128_v41, 0 }
 0x28b   : > { %s2640_s29 = scalar_lea.vmem %s2717_s5, %s1529_s28 }
 0x2b0   : > { %v1157_v45 = vpop.permute.xlu2 %1156 }
 0x2b8   : > { %v1177_v34 = vpop.permute.xlu2 %1176 }
 0x2c0   : > { %v1192_v9 = vpop.permute.xlu2 %1191 }
 0x2c9   : > { %v1207_v58 = vpop.permute.xlu2 %1206 }
 0x2cd   : > { %v1119_v63 = vpop.xlane.xlu0 %1118 }
 0x2ce   : > { %v1120_v56 = vrot.slane %v1119_v63, 4 }
 0x2d0   : > { %v1121_v24 = vadd.f32 %v1120_v56, %v1119_v63  ;;  %v1167_v8 = vpop.permute.xlu1 %1166 }
 0x2d1   : > { %v1222_v18 = vpop.permute.xlu2 %1221 }
 0x2d2   : > { %v1122_v35 = vrot.slane %v1121_v24, 2 }
 0x2d4   : > { %v1123_v43 = vadd.f32 %v1122_v35, %v1121_v24 }
 0x2d6   : > { %v1124_v38 = vrot.slane %v1123_v43, 1 }
 0x2d8   : > { %v1125_v49 = vadd.f32 %v1124_v38, %v1123_v43  ;;  %v1182_v39 = vpop.permute.xlu1 %1181 }
 0x2da   : > { %1535 = vpush %v1125_v49 }
 0x2e0   : > { %v1172_v12 = vpop.permute.xlu0 %1171  ;;  %v1197_v55 = vpop.permute.xlu1 %1196 }
 0x2e8   : > { %v1187_v61 = vpop.permute.xlu0 %1186  ;;  %v1212_v42 = vpop.permute.xlu1 %1211 }
 0x2f0   : > { %v1202_v57 = vpop.permute.xlu0 %1201  ;;  %v1227_v31 = vpop.permute.xlu1 %1226 }
 0x2f8   : > { %v1217_v33 = vpop.permute.xlu0 %1216 }
 0x30b   : > { %s1536_s15 = spop %1535 }
 0x30c   : > { %v1147_v7 = vstv %s1536_s15 }
 0x30d   : > { %v1148_v15 = vsel %vm1146_vm4, %v1147_v7, 0.0 }
 0x30e   : > { %v1229_v17 = vsel %vm1129_vm7, %v1152_v28, %v1148_v15  ;;  %v1230_v54 = vsel %vm1129_vm7, %v1157_v45, %v1148_v15  ;;  %v1231_v3 = vsel %vm1129_vm7, %v1162_v50, %v1148_v15  ;;  %v1232_v30 = vsel %vm1129_vm7, %v1167_v8, %v1148_v15 }
 0x30f   : > { %1246 = vst.msk [vmem:[%s2640_s29] sm:$0xff] %vm1245_vm3, %v1229_v17  ;;  %v1233_v32 = vsel %vm1129_vm7, %v1172_v12, %v1148_v15  ;;  %v1234_v53 = vsel %vm1129_vm7, %v1177_v34, %v1148_v15  ;;  %v1235_v47 = vsel %vm1129_vm7, %v1182_v39, %v1148_v15  ;;  %v1236_v52 = vsel %vm1129_vm7, %v1187_v61, %v1148_v15 }
 0x310   : > { %1247 = vst.msk [vmem:[%s2640_s29 + $0x8] sm:$0xff] %vm1245_vm3, %v1230_v54  ;;  %v1237_v59 = vsel %vm1129_vm7, %v1192_v9, %v1148_v15  ;;  %v1238_v37 = vsel %vm1129_vm7, %v1197_v55, %v1148_v15  ;;  %v1239_v1 = vsel %vm1129_vm7, %v1202_v57, %v1148_v15  ;;  %v1240_v0 = vsel %vm1129_vm7, %v1207_v58, %v1148_v15 }
 0x311   : > { %1248 = vst.msk [vmem:[%s2640_s29 + $0x10] sm:$0xff] %vm1245_vm3, %v1231_v3  ;;  %v1241_v6 = vsel %vm1129_vm7, %v1212_v42, %v1148_v15  ;;  %v1242_v10 = vsel %vm1129_vm7, %v1217_v33, %v1148_v15  ;;  %v1243_v60 = vsel %vm1129_vm7, %v1222_v18, %v1148_v15  ;;  %v1244_v36 = vsel %vm1129_vm7, %v1227_v31, %v1148_v15 }
 0x312   : > { %1249 = vst.msk [vmem:[%s2640_s29 + $0x18] sm:$0xff] %vm1245_vm3, %v1232_v30 }
 0x313   : > { %1250 = vst.msk [vmem:[%s2640_s29 + $0x20] sm:$0xff] %vm1245_vm3, %v1233_v32 }
 0x314   : > { %1251 = vst.msk [vmem:[%s2640_s29 + $0x28] sm:$0xff] %vm1245_vm3, %v1234_v53 }
 0x315   : > { %1252 = vst.msk [vmem:[%s2640_s29 + $0x30] sm:$0xff] %vm1245_vm3, %v1235_v47 }
 0x316   : > { %1253 = vst.msk [vmem:[%s2640_s29 + $0x38] sm:$0xff] %vm1245_vm3, %v1236_v52 }
 0x317   : > { %1254 = vst.msk [vmem:[%s2640_s29 + $0x40] sm:$0xff] %vm1245_vm3, %v1237_v59 }
 0x318   : > { %1255 = vst.msk [vmem:[%s2640_s29 + $0x48] sm:$0xff] %vm1245_vm3, %v1238_v37 }
 0x319   : > { %1256 = vst.msk [vmem:[%s2640_s29 + $0x50] sm:$0xff] %vm1245_vm3, %v1239_v1 }
 0x31a   : > { %1257 = vst.msk [vmem:[%s2640_s29 + $0x58] sm:$0xff] %vm1245_vm3, %v1240_v0 }
 0x31b   : > { %1258 = vst.msk [vmem:[%s2640_s29 + $0x60] sm:$0xff] %vm1245_vm3, %v1241_v6 }
 0x31c   : > { %1259 = vst.msk [vmem:[%s2640_s29 + $0x68] sm:$0xff] %vm1245_vm3, %v1242_v10 }
 0x31d   : > { %1260 = vst.msk [vmem:[%s2640_s29 + $0x70] sm:$0xff] %vm1245_vm3, %v1243_v60 }
 0x31e   : > { %1261 = vst.msk [vmem:[%s2640_s29 + $0x78] sm:$0xff] %vm1245_vm3, %v1244_v36 }
 0x31f PF: > { %p1543_p4 = scmp.ge.s32.totalorder %s1682_s23, 2  ;;  %s1307_s9 = sand.u32 1, %s1662_s18  }
 0x320   : > { %s1308_s7 = scalar_lea.sflag [#allocation5], %s1307_s9 }
 0x321   : > { %p1540_p6 = pnand %p1543_p4, %p1766_p8 }
 0x323   : > { %p1541_p7 = pneg %p1540_p6 }
 0x325   : > { %1657 = dma.done.wait (%p1541_p7), %s1308_s7, 512  }
 0x326   : > { %1659 = vsyncadd (%p1541_p7), %s1308_s7, 4294966784  ;;  %s19_s23 = sadd.s32 1, %s1682_s23   ;;  %s2748_s18 = smov %s1666_s19 }
 0x327   : > { %p16_p9 = scmp.ge.s32.totalorder %s19_s23, 4   ;;  %s2749_s19 = smov %s1670_s20 }
 0x328   : > { %s2750_s20 = smov %s1772_s6  ;;  %s2751_s21 = smov %s1678_s22 }
 0x329   : > { %s2752_s22 = smov %s2754_s26  ;;  %18 = sbr.rel (!%p16_p9) target bundleno = 4 (0x4), region = 91 }
 0x32e   :  { %1326 = vsyncpa [#allocation5], 1 }
 0x32f   :  { %1328 = vsyncpa [#allocation5 + $0x1], 1 }

</bundles_post_ra>
